<compile_context>
chip_gen: v7x
topology: tpu7x:2x2x1
jax: 0.10.0
libtpu: 0.0.40
codegen_flags: <defaults>
</compile_context>

<pallas_src>
import jax
import jax.numpy as jnp
from jax.experimental import pallas as pl
from jax.experimental.pallas import tpu as pltpu


# ----------------------------------------------------------------------------
# Fused Conv1d(12->32,k7,p3)+ReLU+Conv1d(32->64,k3,p1)+ReLU, one batch element
# per grid step.  Convs are expressed as K shifted MXU matmuls; conv2's padding
# is handled with a zeroed, sublane-aligned halo in a VMEM scratch.
# ----------------------------------------------------------------------------
def conv_block_kernel(xp_ref, w1_ref, b1_ref, w2_ref, b2_ref, o_ref, c1s_ref):
    # xp_ref: (L + K1 - 1, Cin) zero-padded input window for one batch element
    # w1_ref: (K1, Cin, C1)   w2_ref: (3, C1, C2)   o_ref: (L, C2)
    # c1s_ref: (L + 16, C1) scratch (8-row zero halo on both sides)
    L, C2 = o_ref.shape
    K1 = w1_ref.shape[0]
    C1 = w1_ref.shape[2]

    acc1 = jnp.zeros((L, C1), jnp.float32)
    for k in range(K1):  # static unroll over kernel taps
        acc1 = acc1 + jnp.dot(xp_ref[k:k + L, :], w1_ref[k],
                              preferred_element_type=jnp.float32)
    c1 = jnp.maximum(acc1 + b1_ref[...], 0.0)

    # conv2 (pad=1) via halo scratch: row 8+j holds c1[j]; rows 0..7 / L+8..L+15
    # are zero, so all stores are sublane-aligned and boundary taps read zeros.
    c1s_ref[0:8, :] = jnp.zeros((8, C1), jnp.float32)
    c1s_ref[L + 8:L + 16, :] = jnp.zeros((8, C1), jnp.float32)
    c1s_ref[8:L + 8, :] = c1

    acc2 = jnp.zeros((L, C2), jnp.float32)
    for k in range(3):
        acc2 = acc2 + jnp.dot(c1s_ref[7 + k:7 + k + L, :], w2_ref[k],
                              preferred_element_type=jnp.float32)
    o_ref[...] = jnp.maximum(acc2 + b2_ref[...], 0.0).astype(o_ref.dtype)


def conv_block(x_nlc, p):
    # x_nlc: (N, L, 12)  ->  (N, L, 64)
    N, L, Cin = x_nlc.shape
    K1, _, C1 = p["conv1_w"].shape
    C2 = p["conv2_w"].shape[2]
    pad1 = K1 // 2
    xp = jnp.pad(x_nlc, ((0, 0), (pad1, pad1), (0, 0)))
    Lp = L + 2 * pad1
    return pl.pallas_call(
        conv_block_kernel,
        out_shape=jax.ShapeDtypeStruct((N, L, C2), jnp.float32),
        grid=(N,),
        in_specs=[
            pl.BlockSpec((None, Lp, Cin), lambda n: (n, 0, 0)),
            pl.BlockSpec((K1, Cin, C1), lambda n: (0, 0, 0)),
            pl.BlockSpec((1, C1), lambda n: (0, 0)),
            pl.BlockSpec((3, C1, C2), lambda n: (0, 0, 0)),
            pl.BlockSpec((1, C2), lambda n: (0, 0)),
        ],
        out_specs=pl.BlockSpec((None, L, C2), lambda n: (n, 0, 0)),
        scratch_shapes=[pltpu.VMEM((L + 16, C1), jnp.float32)],
        compiler_params=pltpu.CompilerParams(
            dimension_semantics=("parallel",)),
    )(xp, p["conv1_w"], p["conv1_b"].reshape(1, C1),
      p["conv2_w"], p["conv2_b"].reshape(1, C2))


# ----------------------------------------------------------------------------
# AvgPool1d(kernel_size=3, stride=2, padding=1), count_include_pad=True.
# Cheap elementwise glue; done in plain JAX.
# ----------------------------------------------------------------------------
def avg_pool1d_k3_s2_p1(x_nlc):
    N, L, C = x_nlc.shape
    Lout = (L - 1) // 2 + 1
    xp = jnp.pad(x_nlc, ((0, 0), (1, 1), (0, 0)))
    return (xp[:, 0:2 * Lout:2] + xp[:, 1:2 * Lout + 1:2]
            + xp[:, 2:2 * Lout + 2:2]) / 3.0


# ----------------------------------------------------------------------------
# Fused 10-layer GRU wavefront + FC head.
# PyTorch GRU semantics, gate order [r, z, n], h0 = 0, no inter-layer dropout.
# ----------------------------------------------------------------------------
def gru_fc_head(x_flat, p, *, batch, seq):
    # x_flat: (T*N, 64) time-major (t-major, n-minor) conv/pool output.
    N, T = batch, seq
    H1 = p["gru1_whh"].shape[1]        # 64
    H2 = p["gru2_whh"].shape[1]        # 16
    NL1 = p["gru1_whh"].shape[0]       # 5
    NL2 = p["gru2_whh"].shape[0]       # 5
    F1 = p["fc1_w"].shape[1]           # 1024
    F2 = p["fc2_w"].shape[1]           # 128
    S = T + NL1 + NL2 - 1              # total wavefront steps
    warm = NL1 + NL2 - 1               # first step at which the last layer is live

    def kernel(x_ref, wih1_0, bih1_0, wih1_r, bih1_r, whh1, bhh1,
               wih2_0, bih2_0, wih2_r, bih2_r, whh2, bhh2,
               w1_hbm, b1_ref, w2_ref, b2_ref,
               o_ref, gx0_ref, acc_ref, w1_vmem, w1_sem):
        # (1) Kick off the big fc1-weight DMA (HBM -> VMEM scratch).  It is
        #     consumed only from wavefront step `warm` onwards, so the transfer
        #     overlaps the gx0 matmul and the GRU warm-up steps.
        pltpu.make_async_copy(w1_hbm, w1_vmem, w1_sem).start()

        # (2) Input projection of GRU-1 layer 0 for all timesteps: one big,
        #     well-filled MXU matmul instead of 150 tiny ones.
        gx0_ref[...] = (jnp.dot(x_ref[...], wih1_0[...],
                                preferred_element_type=jnp.float32)
                        + bih1_0[...])
        acc_ref[...] = jnp.zeros_like(acc_ref)

        def gru_cell(gx, gh, h_prev, H):
            r = jax.nn.sigmoid(gx[:, 0:H] + gh[:, 0:H])
            z = jax.nn.sigmoid(gx[:, H:2 * H] + gh[:, H:2 * H])
            n = jnp.tanh(gx[:, 2 * H:3 * H] + r * gh[:, 2 * H:3 * H])
            return (1.0 - z) * n + z * h_prev

        # Wavefront: at step s, GRU-1 layer l handles time s-l and GRU-2 layer l
        # handles time s-NL1-l.  All per-step reads use the *previous* step's
        # hidden states, so the ~10 layer updates are mutually independent and
        # the LLO scheduler can interleave their matmul/EUP latency chains.
        # (No fori_loop unroll: the wavefront already supplies ~19 independent
        #  matmuls of ILP per step; unrolling would only add vreg pressure.)
        def make_step(with_fc):
            def step(s, carry):
                h1, h2 = carry
                new_h1, new_h2 = [], []
                # ---- GRU-1 stack (input 64, hidden 64) ----
                for l in range(NL1):
                    t = s - l
                    active = jnp.logical_and(t >= 0, t < T)
                    if l == 0:
                        tc = jnp.clip(t, 0, T - 1)
                        row = pl.multiple_of(tc * N, N)
                        gx = gx0_ref[pl.ds(row, N), :]               # (N, 3*H1)
                    else:
                        gx = (jnp.dot(h1[l - 1], wih1_r[l - 1],
                                      preferred_element_type=jnp.float32)
                              + bih1_r[l - 1])
                    gh = (jnp.dot(h1[l], whh1[l],
                                  preferred_element_type=jnp.float32)
                          + bhh1[l])
                    new_h1.append(
                        jnp.where(active, gru_cell(gx, gh, h1[l], H1), h1[l]))
                # ---- GRU-2 stack (input 64 then 16, hidden 16) ----
                for l in range(NL2):
                    t = s - NL1 - l
                    active = jnp.logical_and(t >= 0, t < T)
                    if l == 0:
                        gx = (jnp.dot(h1[NL1 - 1], wih2_0[...],
                                      preferred_element_type=jnp.float32)
                              + bih2_0[...])
                    else:
                        gx = (jnp.dot(h2[l - 1], wih2_r[l - 1],
                                      preferred_element_type=jnp.float32)
                              + bih2_r[l - 1])
                    gh = (jnp.dot(h2[l], whh2[l],
                                  preferred_element_type=jnp.float32)
                          + bhh2[l])
                    h_upd = jnp.where(active, gru_cell(gx, gh, h2[l], H2), h2[l])
                    new_h2.append(h_upd)
                    if with_fc and l == NL2 - 1:
                        # fc1 partial product for timestep t (flatten order is
                        # t-major, h-minor, matching rnn_out.flatten(1)).
                        tc = jnp.clip(t, 0, T - 1)
                        row = pl.multiple_of(tc * H2, H2)
                        w1_blk = w1_vmem[pl.ds(row, H2), :]          # (H2, F1)
                        contrib = jnp.dot(h_upd, w1_blk,
                                          preferred_element_type=jnp.float32)
                        acc_ref[...] = acc_ref[...] + jnp.where(active, contrib, 0.0)
                return (tuple(new_h1), tuple(new_h2))
            return step

        carry0 = (tuple(jnp.zeros((N, H1), jnp.float32) for _ in range(NL1)),
                  tuple(jnp.zeros((N, H2), jnp.float32) for _ in range(NL2)))
        carry = jax.lax.fori_loop(0, warm, make_step(False), carry0)
        # fc1 weights are first needed at step `warm`; the DMA has been in
        # flight since kernel entry, so this wait is mostly/fully hidden.
        pltpu.make_async_copy(w1_hbm, w1_vmem, w1_sem).wait()
        _ = jax.lax.fori_loop(warm, S, make_step(True), carry)

        # (3) Epilogue: fc1 bias + fc2 (no activation between fc1/fc2 in forward()).
        fc1 = acc_ref[...] + b1_ref[...]
        o_ref[...] = (jnp.dot(fc1, w2_ref[...], preferred_element_type=jnp.float32)
                      + b2_ref[...]).astype(o_ref.dtype)

    args = (x_flat,
            p["gru1_wih0"], p["gru1_bih0"], p["gru1_wihr"], p["gru1_bihr"],
            p["gru1_whh"], p["gru1_bhh"],
            p["gru2_wih0"], p["gru2_bih0"], p["gru2_wihr"], p["gru2_bihr"],
            p["gru2_whh"], p["gru2_bhh"],
            p["fc1_w"], p["fc1_b"], p["fc2_w"], p["fc2_b"])

    def vspec(arr):
        nd = arr.ndim
        return pl.BlockSpec(arr.shape, lambda i, _nd=nd: (0,) * _nd)

    in_specs = [vspec(a) for a in args]
    in_specs[13] = pl.BlockSpec(memory_space=pl.ANY)   # fc1_w stays in HBM

    return pl.pallas_call(
        kernel,
        out_shape=jax.ShapeDtypeStruct((N, F2), jnp.float32),
        grid=(1,),
        in_specs=in_specs,
        out_specs=pl.BlockSpec((N, F2), lambda i: (0, 0)),
        scratch_shapes=[
            pltpu.VMEM((T * N, 3 * H1), jnp.float32),   # gx0 for GRU-1 layer 0
            pltpu.VMEM((N, F1), jnp.float32),           # fc1 accumulator
            pltpu.VMEM((T * H2, F1), jnp.float32),      # fc1 weight copy (2400,1024)
            pltpu.SemaphoreType.DMA(()),
        ],
        compiler_params=pltpu.CompilerParams(
            dimension_semantics=("arbitrary",),
            vmem_limit_bytes=32 << 20),                 # valid on v5e/v6e/v7x
    )(*args)


# ----------------------------------------------------------------------------
# Deterministic synthetic parameters (shapes from LSTMFeatures.__init__,
# hid_size=16; gate order [r, z, n], weights stored transposed: (in, 3*hidden)).
# ----------------------------------------------------------------------------
def init_params(key):
    keys = iter(jax.random.split(key, 64))

    def nrm(shape, scale):
        return scale * jax.random.normal(next(keys), shape, jnp.float32)

    s1 = 1.0 / (64 ** 0.5)
    s2 = 1.0 / (16 ** 0.5)
    return {
        "conv1_w": nrm((7, 12, 32), 0.1),    # (K, Cin, Cout)
        "conv1_b": nrm((32,), 0.1),
        "conv2_w": nrm((3, 32, 64), 0.1),
        "conv2_b": nrm((64,), 0.1),
        # gru_1 = GRU(64, 64, num_layers=5)
        "gru1_wih0": nrm((64, 192), s1), "gru1_bih0": nrm((1, 192), s1),
        "gru1_wihr": nrm((4, 64, 192), s1), "gru1_bihr": nrm((4, 1, 192), s1),
        "gru1_whh": nrm((5, 64, 192), s1), "gru1_bhh": nrm((5, 1, 192), s1),
        # gru_2 = GRU(64, 16, num_layers=5)
        "gru2_wih0": nrm((64, 48), s2), "gru2_bih0": nrm((1, 48), s2),
        "gru2_wihr": nrm((4, 16, 48), s2), "gru2_bihr": nrm((4, 1, 48), s2),
        "gru2_whh": nrm((5, 16, 48), s2), "gru2_bhh": nrm((5, 1, 48), s2),
        # fc head
        "fc1_w": nrm((2400, 1024), 1.0 / (2400 ** 0.5)),
        "fc1_b": nrm((1, 1024), 0.02),
        "fc2_w": nrm((1024, 128), 1.0 / (1024 ** 0.5)),
        "fc2_b": nrm((1, 128), 0.02),
    }


# ----------------------------------------------------------------------------
# Full forward pass (matches LSTMFeatures.forward).
# ----------------------------------------------------------------------------
def lstm_features_forward(x_ncl, params):
    # x_ncl: (N, 12, L)  -- PyTorch NCL layout
    N = x_ncl.shape[0]
    x = jnp.transpose(x_ncl, (0, 2, 1))               # (N, L, 12)
    x = conv_block(x, params)                         # (N, L, 64)
    x = avg_pool1d_k3_s2_p1(x)                        # (N, T, 64)
    T = x.shape[1]
    x = jnp.transpose(x, (1, 0, 2)).reshape(T * N, x.shape[2])  # (T*N, 64) time-major
    return gru_fc_head(x, params, batch=N, seq=T)     # (N, 128)


if __name__ == "__main__":
    key = jax.random.PRNGKey(0)
    kx, kp = jax.random.split(key)
    # forward() implies: 12 input channels, seq_len = 300 (-> pooled 150, 150*16 = 2400)
    x = jax.random.normal(kx, (2, 12, 300), jnp.float32)
    params = init_params(kp)
    out = lstm_features_forward(x, params)
    out = jax.block_until_ready(out)
    assert out.shape == (2, 128) and out.dtype == jnp.float32
    print("KERNEL_OK")
</pallas_src>

<mosaic_0001>
module attributes {stable_mosaic.version = 11 : i64} {
  func.func @conv_block_kernel(%arg0: i32, %arg1: memref<1x306x12xf32, #tpu.memory_space<vmem>>, %arg2: memref<7x12x32xf32, #tpu.memory_space<vmem>>, %arg3: memref<1x32xf32, #tpu.memory_space<vmem>>, %arg4: memref<3x32x64xf32, #tpu.memory_space<vmem>>, %arg5: memref<1x64xf32, #tpu.memory_space<vmem>>, %arg6: memref<1x300x64xf32, #tpu.memory_space<vmem>>, %arg7: memref<316x32xf32, #tpu.memory_space<vmem>>) attributes {dimension_semantics = [#tpu.dimension_semantics<parallel>], iteration_bounds = array<i64: 2>, scalar_prefetch = 0 : i64, scratch_operands = 1 : i64, tpu.core_type = #tpu.core_type<tc>, window_params = [{transform_indices = @transform_0, window_bounds = array<i64: 1, 306, 12>}, {pipeline_mode = #tpu.pipeline_mode<synchronous>, transform_indices = @transform_1, window_bounds = array<i64: 7, 12, 32>}, {pipeline_mode = #tpu.pipeline_mode<synchronous>, transform_indices = @transform_2, window_bounds = array<i64: 1, 32>}, {pipeline_mode = #tpu.pipeline_mode<synchronous>, transform_indices = @transform_3, window_bounds = array<i64: 3, 32, 64>}, {pipeline_mode = #tpu.pipeline_mode<synchronous>, transform_indices = @transform_4, window_bounds = array<i64: 1, 64>}, {transform_indices = @transform_5, window_bounds = array<i64: 1, 300, 64>}]} {
    %cst = arith.constant 0.000000e+00 : f32
    %0 = vector.broadcast %cst : f32 to vector<300x32xf32>
    %c0 = arith.constant 0 : index
    %c0_0 = arith.constant 0 : index
    %c0_1 = arith.constant 0 : index
    %1 = vector.load %arg1[%c0, %c0_0, %c0_1] : memref<1x306x12xf32, #tpu.memory_space<vmem>>, vector<1x300x12xf32>
    %2 = vector.shape_cast %1 : vector<1x300x12xf32> to vector<300x12xf32>
    %c0_2 = arith.constant 0 : index
    %c0_3 = arith.constant 0 : index
    %c0_4 = arith.constant 0 : index
    %3 = vector.load %arg2[%c0_2, %c0_3, %c0_4] : memref<7x12x32xf32, #tpu.memory_space<vmem>>, vector<1x12x32xf32>
    %4 = vector.shape_cast %3 : vector<1x12x32xf32> to vector<12x32xf32>
    %cst_5 = arith.constant dense<0.000000e+00> : vector<300x32xf32>
    %5 = tpu.matmul %2, %4, %cst_5 {dimension_numbers = #tpu.dot_dimension_numbers<[1], [0], [0], [1], [0, 0, 1, 1], [], []>} : vector<300x12xf32>, vector<12x32xf32>, vector<300x32xf32> -> vector<300x32xf32>
    %6 = arith.addf %0, %5 : vector<300x32xf32>
    %c0_6 = arith.constant 0 : index
    %c1 = arith.constant 1 : index
    %c0_7 = arith.constant 0 : index
    %7 = vector.load %arg1[%c0_6, %c1, %c0_7] : memref<1x306x12xf32, #tpu.memory_space<vmem>>, vector<1x300x12xf32>
    %8 = vector.shape_cast %7 : vector<1x300x12xf32> to vector<300x12xf32>
    %c1_8 = arith.constant 1 : index
    %c0_9 = arith.constant 0 : index
    %c0_10 = arith.constant 0 : index
    %9 = vector.load %arg2[%c1_8, %c0_9, %c0_10] : memref<7x12x32xf32, #tpu.memory_space<vmem>>, vector<1x12x32xf32>
    %10 = vector.shape_cast %9 : vector<1x12x32xf32> to vector<12x32xf32>
    %cst_11 = arith.constant dense<0.000000e+00> : vector<300x32xf32>
    %11 = tpu.matmul %8, %10, %cst_11 {dimension_numbers = #tpu.dot_dimension_numbers<[1], [0], [0], [1], [0, 0, 1, 1], [], []>} : vector<300x12xf32>, vector<12x32xf32>, vector<300x32xf32> -> vector<300x32xf32>
    %12 = arith.addf %6, %11 : vector<300x32xf32>
    %c0_12 = arith.constant 0 : index
    %c2 = arith.constant 2 : index
    %c0_13 = arith.constant 0 : index
    %13 = vector.load %arg1[%c0_12, %c2, %c0_13] : memref<1x306x12xf32, #tpu.memory_space<vmem>>, vector<1x300x12xf32>
    %14 = vector.shape_cast %13 : vector<1x300x12xf32> to vector<300x12xf32>
    %c2_14 = arith.constant 2 : index
    %c0_15 = arith.constant 0 : index
    %c0_16 = arith.constant 0 : index
    %15 = vector.load %arg2[%c2_14, %c0_15, %c0_16] : memref<7x12x32xf32, #tpu.memory_space<vmem>>, vector<1x12x32xf32>
    %16 = vector.shape_cast %15 : vector<1x12x32xf32> to vector<12x32xf32>
    %cst_17 = arith.constant dense<0.000000e+00> : vector<300x32xf32>
    %17 = tpu.matmul %14, %16, %cst_17 {dimension_numbers = #tpu.dot_dimension_numbers<[1], [0], [0], [1], [0, 0, 1, 1], [], []>} : vector<300x12xf32>, vector<12x32xf32>, vector<300x32xf32> -> vector<300x32xf32>
    %18 = arith.addf %12, %17 : vector<300x32xf32>
    %c0_18 = arith.constant 0 : index
    %c3 = arith.constant 3 : index
    %c0_19 = arith.constant 0 : index
    %19 = vector.load %arg1[%c0_18, %c3, %c0_19] : memref<1x306x12xf32, #tpu.memory_space<vmem>>, vector<1x300x12xf32>
    %20 = vector.shape_cast %19 : vector<1x300x12xf32> to vector<300x12xf32>
    %c3_20 = arith.constant 3 : index
    %c0_21 = arith.constant 0 : index
    %c0_22 = arith.constant 0 : index
    %21 = vector.load %arg2[%c3_20, %c0_21, %c0_22] : memref<7x12x32xf32, #tpu.memory_space<vmem>>, vector<1x12x32xf32>
    %22 = vector.shape_cast %21 : vector<1x12x32xf32> to vector<12x32xf32>
    %cst_23 = arith.constant dense<0.000000e+00> : vector<300x32xf32>
    %23 = tpu.matmul %20, %22, %cst_23 {dimension_numbers = #tpu.dot_dimension_numbers<[1], [0], [0], [1], [0, 0, 1, 1], [], []>} : vector<300x12xf32>, vector<12x32xf32>, vector<300x32xf32> -> vector<300x32xf32>
    %24 = arith.addf %18, %23 : vector<300x32xf32>
    %c0_24 = arith.constant 0 : index
    %c4 = arith.constant 4 : index
    %c0_25 = arith.constant 0 : index
    %25 = vector.load %arg1[%c0_24, %c4, %c0_25] : memref<1x306x12xf32, #tpu.memory_space<vmem>>, vector<1x300x12xf32>
    %26 = vector.shape_cast %25 : vector<1x300x12xf32> to vector<300x12xf32>
    %c4_26 = arith.constant 4 : index
    %c0_27 = arith.constant 0 : index
    %c0_28 = arith.constant 0 : index
    %27 = vector.load %arg2[%c4_26, %c0_27, %c0_28] : memref<7x12x32xf32, #tpu.memory_space<vmem>>, vector<1x12x32xf32>
    %28 = vector.shape_cast %27 : vector<1x12x32xf32> to vector<12x32xf32>
    %cst_29 = arith.constant dense<0.000000e+00> : vector<300x32xf32>
    %29 = tpu.matmul %26, %28, %cst_29 {dimension_numbers = #tpu.dot_dimension_numbers<[1], [0], [0], [1], [0, 0, 1, 1], [], []>} : vector<300x12xf32>, vector<12x32xf32>, vector<300x32xf32> -> vector<300x32xf32>
    %30 = arith.addf %24, %29 : vector<300x32xf32>
    %c0_30 = arith.constant 0 : index
    %c5 = arith.constant 5 : index
    %c0_31 = arith.constant 0 : index
    %31 = vector.load %arg1[%c0_30, %c5, %c0_31] : memref<1x306x12xf32, #tpu.memory_space<vmem>>, vector<1x300x12xf32>
    %32 = vector.shape_cast %31 : vector<1x300x12xf32> to vector<300x12xf32>
    %c5_32 = arith.constant 5 : index
    %c0_33 = arith.constant 0 : index
    %c0_34 = arith.constant 0 : index
    %33 = vector.load %arg2[%c5_32, %c0_33, %c0_34] : memref<7x12x32xf32, #tpu.memory_space<vmem>>, vector<1x12x32xf32>
    %34 = vector.shape_cast %33 : vector<1x12x32xf32> to vector<12x32xf32>
    %cst_35 = arith.constant dense<0.000000e+00> : vector<300x32xf32>
    %35 = tpu.matmul %32, %34, %cst_35 {dimension_numbers = #tpu.dot_dimension_numbers<[1], [0], [0], [1], [0, 0, 1, 1], [], []>} : vector<300x12xf32>, vector<12x32xf32>, vector<300x32xf32> -> vector<300x32xf32>
    %36 = arith.addf %30, %35 : vector<300x32xf32>
    %c0_36 = arith.constant 0 : index
    %c6 = arith.constant 6 : index
    %c0_37 = arith.constant 0 : index
    %37 = vector.load %arg1[%c0_36, %c6, %c0_37] : memref<1x306x12xf32, #tpu.memory_space<vmem>>, vector<1x300x12xf32>
    %38 = vector.shape_cast %37 : vector<1x300x12xf32> to vector<300x12xf32>
    %c6_38 = arith.constant 6 : index
    %c0_39 = arith.constant 0 : index
    %c0_40 = arith.constant 0 : index
    %39 = vector.load %arg2[%c6_38, %c0_39, %c0_40] : memref<7x12x32xf32, #tpu.memory_space<vmem>>, vector<1x12x32xf32>
    %40 = vector.shape_cast %39 : vector<1x12x32xf32> to vector<12x32xf32>
    %cst_41 = arith.constant dense<0.000000e+00> : vector<300x32xf32>
    %41 = tpu.matmul %38, %40, %cst_41 {dimension_numbers = #tpu.dot_dimension_numbers<[1], [0], [0], [1], [0, 0, 1, 1], [], []>} : vector<300x12xf32>, vector<12x32xf32>, vector<300x32xf32> -> vector<300x32xf32>
    %42 = arith.addf %36, %41 : vector<300x32xf32>
    %c0_42 = arith.constant 0 : index
    %c0_43 = arith.constant 0 : index
    %43 = vector.load %arg3[%c0_42, %c0_43] : memref<1x32xf32, #tpu.memory_space<vmem>>, vector<1x32xf32>
    %44 = vector.broadcast %43 : vector<1x32xf32> to vector<300x32xf32>
    %45 = arith.addf %42, %44 : vector<300x32xf32>
    %cst_44 = arith.constant 0.000000e+00 : f32
    %46 = vector.broadcast %cst_44 : f32 to vector<300x32xf32>
    %47 = arith.maximumf %45, %46 : vector<300x32xf32>
    %cst_45 = arith.constant 0.000000e+00 : f32
    %48 = vector.broadcast %cst_45 : f32 to vector<8x32xf32>
    %c0_46 = arith.constant 0 : index
    %c0_47 = arith.constant 0 : index
    %49 = vector.load %arg7[%c0_46, %c0_47] : memref<316x32xf32, #tpu.memory_space<vmem>>, vector<8x32xf32>
    tpu.vector_store %arg7[%c0_46, %c0_47], %48 {strides = array<i32>} : memref<316x32xf32, #tpu.memory_space<vmem>>, vector<8x32xf32>,
    %cst_48 = arith.constant 0.000000e+00 : f32
    %50 = vector.broadcast %cst_48 : f32 to vector<8x32xf32>
    %c308 = arith.constant 308 : index
    %c0_49 = arith.constant 0 : index
    %51 = vector.load %arg7[%c308, %c0_49] : memref<316x32xf32, #tpu.memory_space<vmem>>, vector<8x32xf32>
    tpu.vector_store %arg7[%c308, %c0_49], %50 {strides = array<i32>} : memref<316x32xf32, #tpu.memory_space<vmem>>, vector<8x32xf32>,
    %c8 = arith.constant 8 : index
    %c0_50 = arith.constant 0 : index
    %52 = vector.load %arg7[%c8, %c0_50] : memref<316x32xf32, #tpu.memory_space<vmem>>, vector<300x32xf32>
    tpu.vector_store %arg7[%c8, %c0_50], %47 {strides = array<i32>} : memref<316x32xf32, #tpu.memory_space<vmem>>, vector<300x32xf32>,
    %cst_51 = arith.constant 0.000000e+00 : f32
    %53 = vector.broadcast %cst_51 : f32 to vector<300x64xf32>
    %c7 = arith.constant 7 : index
    %c0_52 = arith.constant 0 : index
    %54 = vector.load %arg7[%c7, %c0_52] : memref<316x32xf32, #tpu.memory_space<vmem>>, vector<300x32xf32>
    %c0_53 = arith.constant 0 : index
    %c0_54 = arith.constant 0 : index
    %c0_55 = arith.constant 0 : index
    %55 = vector.load %arg4[%c0_53, %c0_54, %c0_55] : memref<3x32x64xf32, #tpu.memory_space<vmem>>, vector<1x32x64xf32>
    %56 = vector.shape_cast %55 : vector<1x32x64xf32> to vector<32x64xf32>
    %cst_56 = arith.constant dense<0.000000e+00> : vector<300x64xf32>
    %57 = tpu.matmul %54, %56, %cst_56 {dimension_numbers = #tpu.dot_dimension_numbers<[1], [0], [0], [1], [0, 0, 1, 1], [], []>} : vector<300x32xf32>, vector<32x64xf32>, vector<300x64xf32> -> vector<300x64xf32>
    %58 = arith.addf %53, %57 : vector<300x64xf32>
    %c8_57 = arith.constant 8 : index
    %c0_58 = arith.constant 0 : index
    %59 = vector.load %arg7[%c8_57, %c0_58] : memref<316x32xf32, #tpu.memory_space<vmem>>, vector<300x32xf32>
    %c1_59 = arith.constant 1 : index
    %c0_60 = arith.constant 0 : index
    %c0_61 = arith.constant 0 : index
    %60 = vector.load %arg4[%c1_59, %c0_60, %c0_61] : memref<3x32x64xf32, #tpu.memory_space<vmem>>, vector<1x32x64xf32>
    %61 = vector.shape_cast %60 : vector<1x32x64xf32> to vector<32x64xf32>
    %cst_62 = arith.constant dense<0.000000e+00> : vector<300x64xf32>
    %62 = tpu.matmul %59, %61, %cst_62 {dimension_numbers = #tpu.dot_dimension_numbers<[1], [0], [0], [1], [0, 0, 1, 1], [], []>} : vector<300x32xf32>, vector<32x64xf32>, vector<300x64xf32> -> vector<300x64xf32>
    %63 = arith.addf %58, %62 : vector<300x64xf32>
    %c9 = arith.constant 9 : index
    %c0_63 = arith.constant 0 : index
    %64 = vector.load %arg7[%c9, %c0_63] : memref<316x32xf32, #tpu.memory_space<vmem>>, vector<300x32xf32>
    %c2_64 = arith.constant 2 : index
    %c0_65 = arith.constant 0 : index
    %c0_66 = arith.constant 0 : index
    %65 = vector.load %arg4[%c2_64, %c0_65, %c0_66] : memref<3x32x64xf32, #tpu.memory_space<vmem>>, vector<1x32x64xf32>
    %66 = vector.shape_cast %65 : vector<1x32x64xf32> to vector<32x64xf32>
    %cst_67 = arith.constant dense<0.000000e+00> : vector<300x64xf32>
    %67 = tpu.matmul %64, %66, %cst_67 {dimension_numbers = #tpu.dot_dimension_numbers<[1], [0], [0], [1], [0, 0, 1, 1], [], []>} : vector<300x32xf32>, vector<32x64xf32>, vector<300x64xf32> -> vector<300x64xf32>
    %68 = arith.addf %63, %67 : vector<300x64xf32>
    %c0_68 = arith.constant 0 : index
    %c0_69 = arith.constant 0 : index
    %69 = vector.load %arg5[%c0_68, %c0_69] : memref<1x64xf32, #tpu.memory_space<vmem>>, vector<1x64xf32>
    %70 = vector.broadcast %69 : vector<1x64xf32> to vector<300x64xf32>
    %71 = arith.addf %68, %70 : vector<300x64xf32>
    %cst_70 = arith.constant 0.000000e+00 : f32
    %72 = vector.broadcast %cst_70 : f32 to vector<300x64xf32>
    %73 = arith.maximumf %71, %72 : vector<300x64xf32>
    %c0_71 = arith.constant 0 : index
    %c0_72 = arith.constant 0 : index
    %c0_73 = arith.constant 0 : index
    %74 = vector.load %arg6[%c0_71, %c0_72, %c0_73] : memref<1x300x64xf32, #tpu.memory_space<vmem>>, vector<1x300x64xf32>
    %75 = vector.shape_cast %74 : vector<1x300x64xf32> to vector<300x64xf32>
    %76 = vector.shape_cast %73 : vector<300x64xf32> to vector<1x300x64xf32>
    tpu.vector_store %arg6[%c0_71, %c0_72, %c0_73], %76 {strides = array<i32>} : memref<1x300x64xf32, #tpu.memory_space<vmem>>, vector<1x300x64xf32>,
    return
  }
  func.func @transform_0(%arg0: i32) -> (i32, i32, i32) {
    %c0_i32 = arith.constant 0 : i32
    %c0_i32_0 = arith.constant 0 : i32
    %c0_i32_1 = arith.constant 0 : i32
    return %arg0, %c0_i32, %c0_i32_0 : i32, i32, i32
  }
  func.func @transform_1(%arg0: i32) -> (i32, i32, i32) {
    %c0_i32 = arith.constant 0 : i32
    %c0_i32_0 = arith.constant 0 : i32
    %c0_i32_1 = arith.constant 0 : i32
    %c0_i32_2 = arith.constant 0 : i32
    return %c0_i32, %c0_i32_0, %c0_i32_1 : i32, i32, i32
  }
  func.func @transform_2(%arg0: i32) -> (i32, i32) {
    %c0_i32 = arith.constant 0 : i32
    %c0_i32_0 = arith.constant 0 : i32
    %c0_i32_1 = arith.constant 0 : i32
    return %c0_i32, %c0_i32_0 : i32, i32
  }
  func.func @transform_3(%arg0: i32) -> (i32, i32, i32) {
    %c0_i32 = arith.constant 0 : i32
    %c0_i32_0 = arith.constant 0 : i32
    %c0_i32_1 = arith.constant 0 : i32
    %c0_i32_2 = arith.constant 0 : i32
    return %c0_i32, %c0_i32_0, %c0_i32_1 : i32, i32, i32
  }
  func.func @transform_4(%arg0: i32) -> (i32, i32) {
    %c0_i32 = arith.constant 0 : i32
    %c0_i32_0 = arith.constant 0 : i32
    %c0_i32_1 = arith.constant 0 : i32
    return %c0_i32, %c0_i32_0 : i32, i32
  }
  func.func @transform_5(%arg0: i32) -> (i32, i32, i32) {
    %c0_i32 = arith.constant 0 : i32
    %c0_i32_0 = arith.constant 0 : i32
    %c0_i32_1 = arith.constant 0 : i32
    return %arg0, %c0_i32, %c0_i32_0 : i32, i32, i32
  }
}

</mosaic_0001>

<bundles_post_ra>
// kernel: tpu_custom_call.1
= control target key start
LH: loop header
LB: loop body
LE: loop exit
PB: predicated region body
PF: predicated region fallthrough
CT: control target
= control target key end

     0   :  { %s6751_s18 = smov 0   ;;  %s7862_s0 = inlined_call_operand.vmem [shape: f32[2,306,12], index: 0, kind: input, shape index: {}]   ;;  %s7863_s1 = inlined_call_operand.vmem [shape: f32[7,12,32], index: 1, kind: input, shape index: {}]   ;;  %s7864_s2 = inlined_call_operand.vmem [shape: f32[1,32], index: 2, kind: input, shape index: {}]   ;;  %s7865_s3 = inlined_call_operand.vmem [shape: f32[3,32,64], index: 3, kind: input, shape index: {}]   ;;  %s7866_s4 = inlined_call_operand.vmem [shape: f32[1,64], index: 4, kind: input, shape index: {}]   ;;  %s7867_s5 = inlined_call_operand.vmem [shape: f32[2,300,64], index: 5, kind: output, shape index: {}]  }
   0x1 LB: > { %s4883_s19 = sadd.s32 4294967295, %s6717_s18   ;;  %p4887_p0 = scmp.ge.s32.totalorder %s6717_s18, 1  ;;  %s6717_s18 = sphi %s6751_s18, %s15_s18  }
   0x2   : > { %p187_p1 = scmp.lt.s32.totalorder %s6717_s18, 3 }
   0x4   : > { %p188_p2 = pnand %p4887_p0, %p187_p1 }
   0x5   : > { %vm421_vm0 = vcmask (!%p188_p2), 1043456   ;;  %v4970_v0 = vld [vmem:[%s7863_s1 + $0x20] sm:$0xff] (!%p188_p2)  ;;  %v4971_v1 = vld [vmem:[%s7863_s1 + $0x28] sm:$0xf] (!%p188_p2)  ;;  %p215_p3 = scmp.lt.s32.totalorder (!%p188_p2), %s4883_s19, 1  ;;  %vm6719_vm1 = vmmov (!%p188_p2), 1  }
   0x6   : > { %191 = sbr.rel (%p188_p2) target bundleno = 993 (0x3e1), region = 40  ;;  %vm6765_vm2 = vmpackc.low (!%p188_p2), %vm421_vm0, %vm6719_vm1  ;;  %v6341_v3 = vpack.c.bf16 (!%p188_p2), %v4971_v1, %v4970_v0  ;;  %v5011_v4 = vld [vmem:[%s7863_s1 + $0x30] sm:$0xff] (!%p188_p2)  ;;  %v5012_v5 = vld [vmem:[%s7863_s1 + $0x38] sm:$0xf] (!%p188_p2)  ;;  %vm306_vm3 = vcmask (!%p188_p2), 97280   ;;  %vm3390_vm4 = vcmask (!%p188_p2), 261120  }
   0x7   : > { %v6347_v6 = vpack.c.bf16 (!%p188_p2), %v5012_v5, %v5011_v4  ;;  %v5052_v7 = vld [vmem:[%s7863_s1 + $0x40] sm:$0xff] (!%p188_p2)  ;;  %v5053_v8 = vld [vmem:[%s7863_s1 + $0x48] sm:$0xf] (!%p188_p2)  ;;  %v4890_v25 = vld [vmem:[%s7863_s1 + $0x10] sm:$0xff] (!%p188_p2)  ;;  %vm3430_vm5 = vcmask (!%p188_p2), 257024   ;;  %vm4788_vm6 = vcmask (!%p188_p2), 523264  }
   0x8   : > { %6343 = vmatprep.subr.msk.bf16.mxu0 (!%p188_p2), %vm6765_vm2, %v6341_v3  ;;  %v6798_v12 = vpack.c.bf16 (!%p188_p2), %v5053_v8, %v5052_v7  ;;  %v4891_v26 = vld [vmem:[%s7863_s1 + $0x18] sm:$0xf] (!%p188_p2)  ;;  %vm4826_vm7 = vcmask (!%p188_p2), 519168  }
   0x9   : > { %6346 = vmatpush3.bf16.msk.msra.mxu0 (!%p188_p2), %vm6765_vm2, %v6341_v3  ;;  %v6329_v27 = vpack.c.bf16 (!%p188_p2), %v4891_v26, %v4890_v25 }
   0xa   : > { %6349 = vmatprep.subr.msk.bf16.mxu0 (!%p188_p2), %vm6765_vm2, %v6347_v6 }
   0xb   : > { %6331 = vmatprep.subr.msk.bf16.mxu1 (!%p188_p2), %vm6765_vm2, %v6329_v27 }
   0xc   : > { %6334 = vmatpush3.bf16.msk.msra.mxu1 (!%p188_p2), %vm6765_vm2, %v6329_v27 }
   0xd   : > { %s7871_s19 = smov (!%p215_p3, %s4883_s19), 1 }
   0xe   : > { %s6699_s28 = smul.u32 312, %s7871_s19 }
   0xf   : > { %s6700_s7 = smul.u32 304, %s7871_s19 }
  0x10   : > { %s6793_s10 = scalar_lea.vmem %s7862_s0, %s6699_s28 }
  0x11   : > { %v1052_v9 = vld [vmem:[%s6793_s10 + $0x2] sm:$0xff]  ;;  %v1053_v10 = vld [vmem:[%s6793_s10 + $0xa] sm:$0xff]  ;;  %v1054_v11 = vld [vmem:[%s6793_s10 + $0x12] sm:$0xff] }
  0x12   : > { %5833 = vmatprep.mubr.msk.f32.mxu0 %vm306_vm3, %v1052_v9  ;;  %v1055_v13 = vld [vmem:[%s6793_s10 + $0x1a] sm:$0xff]  ;;  %v1056_v14 = vld [vmem:[%s6793_s10 + $0x22] sm:$0xff]  ;;  %v1057_v15 = vld [vmem:[%s6793_s10 + $0x2a] sm:$0xff] }
  0x13   : > { %5834 = vmatmul.mubr.msk.f32.vlgmr.msra.gmra.mrb[0].mxu0 %vm306_vm3, %v1053_v10  ;;  %v1058_v16 = vld [vmem:[%s6793_s10 + $0x32] sm:$0xff]  ;;  %v1059_v17 = vld [vmem:[%s6793_s10 + $0x3a] sm:$0xff]  ;;  %v1060_v18 = vld [vmem:[%s6793_s10 + $0x42] sm:$0xff] }
  0x14   : > { %6352 = vmatpush3.bf16.msk.msra.mxu0 %vm6765_vm2, %v6347_v6  ;;  %5836 = vmatprep.mubr.msk.f32.mxu0 %vm306_vm3, %v1054_v11  ;;  %v1061_v19 = vld [vmem:[%s6793_s10 + $0x4a] sm:$0xff]  ;;  %v1062_v20 = vld [vmem:[%s6793_s10 + $0x52] sm:$0xff]  ;;  %v1063_v21 = vld [vmem:[%s6793_s10 + $0x5a] sm:$0xff] }
  0x15   : > { %6355 = vmatprep.subr.msk.bf16.mxu0 %vm6765_vm2, %v6798_v12  ;;  %v1064_v22 = vld [vmem:[%s6793_s10 + $0x62] sm:$0xff]  ;;  %v1065_v23 = vld [vmem:[%s6793_s10 + $0x6a] sm:$0xff]  ;;  %v1066_v24 = vld [vmem:[%s6793_s10 + $0x72] sm:$0xff] }
  0x16   : > { %v265_v28 = vld [vmem:[%s6793_s10 + $0x1] sm:$0xff]  ;;  %v266_v31 = vld [vmem:[%s6793_s10 + $0x9] sm:$0xff]  ;;  %v267_v32 = vld [vmem:[%s6793_s10 + $0x11] sm:$0xff] }
  0x17   : > { %5837 = vmatmul.mubr.msk.f32.gmra.mrb[2].mxu0 %vm306_vm3, %v1055_v13  ;;  %v1067_v29 = vld [vmem:[%s6793_s10 + $0x7a] sm:$0xff]  ;;  %5711 = vmatprep.mubr.msk.f32.mxu1 %vm306_vm3, %v265_v28  ;;  %v1068_v30 = vld [vmem:[%s6793_s10 + $0x82] sm:$0xff]  ;;  %v1069_v33 = vld [vmem:[%s6793_s10 + $0x8a] sm:$0xff] }
  0x18   : > { %5839 = vmatprep.mubr.msk.f32.mxu0 %vm306_vm3, %v1056_v14  ;;  %v1070_v34 = vld [vmem:[%s6793_s10 + $0x92] sm:$0xff]  ;;  %5712 = vmatmul.mubr.msk.f32.vlgmr.msra.gmra.mrb[0].mxu1 %vm306_vm3, %v266_v31  ;;  %v269_v36 = vld [vmem:[%s6793_s10 + $0x21] sm:$0xff]  ;;  %v270_v39 = vld [vmem:[%s6793_s10 + $0x29] sm:$0xff] }
  0x19   : > { %5714 = vmatprep.mubr.msk.f32.mxu1 %vm306_vm3, %v267_v32  ;;  %v268_v35 = vld [vmem:[%s6793_s10 + $0x19] sm:$0xff]  ;;  %v1072_v38 = vld [vmem:[%s6793_s10 + $0xa2] sm:$0xff]  ;;  %v271_v40 = vld [vmem:[%s6793_s10 + $0x31] sm:$0xff] }
  0x1a   : > { %v1071_v37 = vld [vmem:[%s6793_s10 + $0x9a] sm:$0xff]  ;;  %v1073_v41 = vld [vmem:[%s6793_s10 + $0xaa] sm:$0xff]  ;;  %v1074_v42 = vld [vmem:[%s6793_s10 + $0xb2] sm:$0xff] }
  0x1b   : > { %5840 = vmatmul.mubr.msk.f32.gmra.mrb[4].mxu0 %vm306_vm3, %v1057_v15  ;;  %v272_v43 = vld [vmem:[%s6793_s10 + $0x39] sm:$0xff]  ;;  %v273_v44 = vld [vmem:[%s6793_s10 + $0x41] sm:$0xff]  ;;  %v274_v47 = vld [vmem:[%s6793_s10 + $0x49] sm:$0xff] }
  0x1c   : > { %5842 = vmatprep.mubr.msk.f32.mxu0 %vm306_vm3, %v1058_v16  ;;  %5715 = vmatmul.mubr.msk.f32.gmra.mrb[2].mxu1 %vm306_vm3, %v268_v35  ;;  %v1075_v45 = vld [vmem:[%s6793_s10 + $0xba] sm:$0xff]  ;;  %v1076_v46 = vld [vmem:[%s6793_s10 + $0xc2] sm:$0xff]  ;;  %v275_v48 = vld [vmem:[%s6793_s10 + $0x51] sm:$0xff] }
  0x1d   : > { %5717 = vmatprep.mubr.msk.f32.mxu1 %vm306_vm3, %v269_v36  ;;  %v1077_v49 = vld [vmem:[%s6793_s10 + $0xca] sm:$0xff]  ;;  %v1078_v50 = vld [vmem:[%s6793_s10 + $0xd2] sm:$0xff]  ;;  %v277_v52 = vld [vmem:[%s6793_s10 + $0x61] sm:$0xff] }
  0x1e   : > { %v276_v51 = vld [vmem:[%s6793_s10 + $0x59] sm:$0xff]  ;;  %v1080_v54 = vld [vmem:[%s6793_s10 + $0xe2] sm:$0xff]  ;;  %v279_v56 = vld [vmem:[%s6793_s10 + $0x71] sm:$0xff] }
  0x1f   : > { %5843 = vmatmul.mubr.msk.f32.gmra.mrb[6].mxu0 %vm306_vm3, %v1059_v17  ;;  %v1079_v53 = vld [vmem:[%s6793_s10 + $0xda] sm:$0xff]  ;;  %v278_v55 = vld [vmem:[%s6793_s10 + $0x69] sm:$0xff]  ;;  %v1082_v58 = vld [vmem:[%s6793_s10 + $0xf2] sm:$0xff] }
  0x20   : > { %5845 = vmatprep.mubr.msk.f32.mxu0 %vm306_vm3, %v1060_v18  ;;  %5718 = vmatmul.mubr.msk.f32.gmra.mrb[4].mxu1 %vm306_vm3, %v270_v39  ;;  %v1081_v57 = vld [vmem:[%s6793_s10 + $0xea] sm:$0xff]  ;;  %v280_v59 = vld [vmem:[%s6793_s10 + $0x79] sm:$0xff]  ;;  %v281_v60 = vld [vmem:[%s6793_s10 + $0x81] sm:$0xff] }
  0x21   : > { %5720 = vmatprep.mubr.msk.f32.mxu1 %vm306_vm3, %v271_v40  ;;  %v1083_v61 = vld [vmem:[%s6793_s10 + $0xfa] sm:$0xff]  ;;  %v1084_v62 = vld [vmem:[%s6793_s10 + $0x102] sm:$0xff]  ;;  %v283_v0 = vld [vmem:[%s6793_s10 + $0x91] sm:$0xff] }
  0x22   : > { %v282_v63 = vld [vmem:[%s6793_s10 + $0x89] sm:$0xff]  ;;  %v1086_v3 = vld [vmem:[%s6793_s10 + $0x112] sm:$0xff]  ;;  %v285_v5 = vld [vmem:[%s6793_s10 + $0xa1] sm:$0xff] }
  0x23   : > { %5846 = vmatmul.mubr.msk.f32.gmra.mrb[8].mxu0 %vm306_vm3, %v1061_v19  ;;  %v1085_v1 = vld [vmem:[%s6793_s10 + $0x10a] sm:$0xff]  ;;  %v284_v4 = vld [vmem:[%s6793_s10 + $0x99] sm:$0xff]  ;;  %v1088_v7 = vld [vmem:[%s6793_s10 + $0x122] sm:$0xff] }
  0x24   : > { %5848 = vmatprep.mubr.msk.f32.mxu0 %vm306_vm3, %v1062_v20  ;;  %5721 = vmatmul.mubr.msk.f32.gmra.mrb[6].mxu1 %vm306_vm3, %v272_v43  ;;  %v1087_v6 = vld [vmem:[%s6793_s10 + $0x11a] sm:$0xff]  ;;  %v286_v8 = vld [vmem:[%s6793_s10 + $0xa9] sm:$0xff]  ;;  %v287_v9 = vld [vmem:[%s6793_s10 + $0xb1] sm:$0xff] }
  0x25   : > { %5723 = vmatprep.mubr.msk.f32.mxu1 %vm306_vm3, %v273_v44  ;;  %v1089_v10 = vld [vmem:[%s6793_s10 + $0x12a] sm:$0xf]  ;;  %v5093_v13 = vld [vmem:[%s7863_s1 + $0x50] sm:$0xff]  ;;  %v5094_v14 = vld [vmem:[%s7863_s1 + $0x58] sm:$0xf] }
  0x26   : > { %v1503_v11 = vld [vmem:[%s6793_s10 + $0x3] sm:$0xff]  ;;  %v288_v15 = vld [vmem:[%s6793_s10 + $0xb9] sm:$0xff]  ;;  %v1504_v17 = vld [vmem:[%s6793_s10 + $0xb] sm:$0xff]  ;;  %v6946_v19 = vpack.c.bf16 %v5094_v14, %v5093_v13 }
  0x27   : > { %5849 = vmatmul.mubr.msk.f32.gmra.mrb[10].mxu0 %vm306_vm3, %v1063_v21  ;;  %v289_v16 = vld [vmem:[%s6793_s10 + $0xc1] sm:$0xff]  ;;  %v1505_v18 = vld [vmem:[%s6793_s10 + $0x13] sm:$0xff]  ;;  %v290_v20 = vld [vmem:[%s6793_s10 + $0xc9] sm:$0xff] }
  0x28   : > { %5851 = vmatprep.mubr.msk.f32.mxu0 %vm306_vm3, %v1064_v22  ;;  %5724 = vmatmul.mubr.msk.f32.gmra.mrb[8].mxu1 %vm306_vm3, %v274_v47  ;;  %v291_v21 = vld [vmem:[%s6793_s10 + $0xd1] sm:$0xff]  ;;  %v1506_v22 = vld [vmem:[%s6793_s10 + $0x1b] sm:$0xff]  ;;  %v294_v27 = vld [vmem:[%s6793_s10 + $0xe9] sm:$0xff] }
  0x29   : > { %5726 = vmatprep.mubr.msk.f32.mxu1 %vm306_vm3, %v275_v48  ;;  %v1508_v25 = vld [vmem:[%s6793_s10 + $0x2b] sm:$0xff]  ;;  %v1509_v26 = vld [vmem:[%s6793_s10 + $0x33] sm:$0xff]  ;;  %v297_v32 = vld [vmem:[%s6793_s10 + $0x101] sm:$0xff] }
  0x2a   : > { %v295_v28 = vld [vmem:[%s6793_s10 + $0xf1] sm:$0xff]  ;;  %v296_v31 = vld [vmem:[%s6793_s10 + $0xf9] sm:$0xff]  ;;  %v298_v35 = vld [vmem:[%s6793_s10 + $0x109] sm:$0xff] }
  0x2b   : > { %5852 = vmatmul.mubr.msk.f32.gmra.mrb[12].mxu0 %vm306_vm3, %v1065_v23  ;;  %v1507_v23 = vld [vmem:[%s6793_s10 + $0x23] sm:$0xff]  ;;  %v299_v36 = vld [vmem:[%s6793_s10 + $0x111] sm:$0xff]  ;;  %v1518_v48 = vld [vmem:[%s6793_s10 + $0x7b] sm:$0xff] }
  0x2c   : > { %5854 = vmatprep.mubr.msk.f32.mxu0 %vm306_vm3, %v1066_v24  ;;  %5727 = vmatmul.mubr.msk.f32.gmra.mrb[10].mxu1 %vm306_vm3, %v276_v51  ;;  %v292_v24 = vld [vmem:[%s6793_s10 + $0xd9] sm:$0xff]  ;;  %v264_v39 = vld [vmem:[%s7863_s1 + $0x8] sm:$0xf]  ;;  %v227_v51 = vld [vmem:[%s6793_s10 + $0x10] sm:$0xff] }
  0x2d   : > { %5729 = vmatprep.mubr.msk.f32.mxu1 %vm306_vm3, %v277_v52  ;;  %v1515_v40 = vld [vmem:[%s6793_s10 + $0x63] sm:$0xff]  ;;  %v1516_v44 = vld [vmem:[%s6793_s10 + $0x6b] sm:$0xff] }
  0x2e   : > { %v301_v43 = vld [vmem:[%s6793_s10 + $0x121] sm:$0xff]  ;;  %v1520_v52 = vld [vmem:[%s6793_s10 + $0x8b] sm:$0xff] }
  0x2f   : > { %5855 = vmatmul.mubr.msk.f32.gmra.mrb[14].mxu0 %vm306_vm3, %v1067_v29  ;;  %v1510_v29 = vld [vmem:[%s6793_s10 + $0x3b] sm:$0xff]  ;;  %v239_v13 = vld [vmem:[%s6793_s10 + $0x70] sm:$0xff] }
  0x30   : > { %5857 = vmatprep.mubr.msk.f32.mxu0 %vm306_vm3, %v1068_v30  ;;  %5730 = vmatmul.mubr.msk.f32.gmra.mrb[12].mxu1 %vm306_vm3, %v278_v55  ;;  %v1511_v30 = vld [vmem:[%s6793_s10 + $0x43] sm:$0xff]  ;;  %v1532_v14 = vld [vmem:[%s6793_s10 + $0xeb] sm:$0xff] }
  0x31   : > { %5732 = vmatprep.mubr.msk.f32.mxu1 %vm306_vm3, %v279_v56  ;;  %v225_v47 = vld [vmem:[%s6793_s10] sm:$0xff] }
  0x32   : > { %v229_v55 = vld [vmem:[%s6793_s10 + $0x20] sm:$0xff] }
  0x33   : > { %5858 = vmatmul.mubr.msk.f32.gmra.mrb[16].mxu0 %vm306_vm3, %v1069_v33  ;;  %v1512_v33 = vld [vmem:[%s6793_s10 + $0x4b] sm:$0xff]  ;;  %v1522_v56 = vld [vmem:[%s6793_s10 + $0x9b] sm:$0xff] }
  0x34   : > { %5860 = vmatprep.mubr.msk.f32.mxu0 %vm306_vm3, %v1070_v34  ;;  %5733 = vmatmul.mubr.msk.f32.gmra.mrb[14].mxu1 %vm306_vm3, %v280_v59  ;;  %v1513_v34 = vld [vmem:[%s6793_s10 + $0x53] sm:$0xff]  ;;  %v2412_v2 = vld [vmem:[%s6793_s10 + $0x3d] sm:$0xff] }
  0x35   : > { %5735 = vmatprep.mubr.msk.f32.mxu1 %vm306_vm3, %v281_v60  ;;  %v231_v59 = vld [vmem:[%s6793_s10 + $0x30] sm:$0xff] }
  0x36   : > { %v1524_v60 = vld [vmem:[%s6793_s10 + $0xab] sm:$0xff] }
  0x37   : > { %5861 = vmatmul.mubr.msk.f32.gmra.mrb[18].mxu0 %vm306_vm3, %v1071_v37  ;;  %v263_v37 = vld [vmem:[%s7863_s1] sm:$0xff] }
  0x38   : > { %5863 = vmatprep.mubr.msk.f32.mxu0 %vm306_vm3, %v1072_v38  ;;  %5736 = vmatmul.mubr.msk.f32.gmra.mrb[16].mxu1 %vm306_vm3, %v282_v63  ;;  %v1514_v38 = vld [vmem:[%s6793_s10 + $0x5b] sm:$0xff] }
  0x39   : > { %5738 = vmatprep.mubr.msk.f32.mxu1 %vm306_vm3, %v283_v0  ;;  %v233_v63 = vld [vmem:[%s6793_s10 + $0x40] sm:$0xff] }
  0x3a   : > { %v1526_v0 = vld [vmem:[%s6793_s10 + $0xbb] sm:$0xff] }
  0x3b   : > { %5864 = vmatmul.mubr.msk.f32.gmra.mrb[20].mxu0 %vm306_vm3, %v1073_v41  ;;  %v6335_v41 = vpack.c.bf16 %v264_v39, %v263_v37  ;;  %v1956_v37 = vld [vmem:[%s6793_s10 + $0x14] sm:$0xff]  ;;  %v250_v39 = vld [vmem:[%s6793_s10 + $0xc8] sm:$0xff] }
  0x3c   : > { %5866 = vmatprep.mubr.msk.f32.mxu0 %vm306_vm3, %v1074_v42  ;;  %5739 = vmatmul.mubr.msk.f32.gmra.mrb[18].mxu1 %vm306_vm3, %v284_v4  ;;  %v300_v42 = vld [vmem:[%s6793_s10 + $0x119] sm:$0xff]  ;;  %v235_v4 = vld [vmem:[%s6793_s10 + $0x50] sm:$0xff] }
  0x3d   : > { %5741 = vmatprep.mubr.msk.f32.mxu1 %vm306_vm3, %v285_v5  ;;  %6337 = vmatprep.subr.msk.bf16.mxu1 %vm6765_vm2, %v6335_v41  ;;  %v1528_v5 = vld [vmem:[%s6793_s10 + $0xcb] sm:$0xff] }
  0x3e   : > { %6340 = vmatpush3.bf16.msk.msra.mxu1 %vm6765_vm2, %v6335_v41  ;;  %v1957_v41 = vld [vmem:[%s6793_s10 + $0x1c] sm:$0xff] }
  0x3f   : > { %5867 = vmatmul.mubr.msk.f32.gmra.mrb[22].mxu0 %vm306_vm3, %v1075_v45  ;;  %v1517_v45 = vld [vmem:[%s6793_s10 + $0x73] sm:$0xff] }
  0x40   : > { %5869 = vmatprep.mubr.msk.f32.mxu0 %vm306_vm3, %v1076_v46  ;;  %5742 = vmatmul.mubr.msk.f32.gmra.mrb[20].mxu1 %vm306_vm3, %v286_v8  ;;  %v302_v46 = vld [vmem:[%s6793_s10 + $0x129] sm:$0xf]  ;;  %v237_v8 = vld [vmem:[%s6793_s10 + $0x60] sm:$0xff] }
  0x41   : > { %5744 = vmatprep.mubr.msk.f32.mxu1 %vm306_vm3, %v287_v9  ;;  %v1530_v9 = vld [vmem:[%s6793_s10 + $0xdb] sm:$0xff] }
  0x43   : > { %5870 = vmatmul.mubr.msk.f32.gmra.mrb[24].mxu0 %vm306_vm3, %v1077_v49  ;;  %v1519_v49 = vld [vmem:[%s6793_s10 + $0x83] sm:$0xff] }
  0x44   : > { %5872 = vmatprep.mubr.msk.f32.mxu0 %vm306_vm3, %v1078_v50  ;;  %5745 = vmatmul.mubr.msk.f32.gmra.mrb[22].mxu1 %vm306_vm3, %v288_v15  ;;  %v226_v50 = vld [vmem:[%s6793_s10 + $0x8] sm:$0xff]  ;;  %v1533_v15 = vld [vmem:[%s6793_s10 + $0xf3] sm:$0xff] }
  0x45   : > { %5747 = vmatprep.mubr.msk.f32.mxu1 %vm306_vm3, %v289_v16  ;;  %v240_v16 = vld [vmem:[%s6793_s10 + $0x78] sm:$0xff] }
  0x47   : > { %5873 = vmatmul.mubr.msk.f32.gmra.mrb[26].mxu0 %vm306_vm3, %v1079_v53  ;;  %v1521_v53 = vld [vmem:[%s6793_s10 + $0x93] sm:$0xff] }
  0x48   : > { %5875 = vmatprep.mubr.msk.f32.mxu0 %vm306_vm3, %v1080_v54  ;;  %5748 = vmatmul.mubr.msk.f32.gmra.mrb[24].mxu1 %vm306_vm3, %v290_v20  ;;  %v228_v54 = vld [vmem:[%s6793_s10 + $0x18] sm:$0xff]  ;;  %v1535_v20 = vld [vmem:[%s6793_s10 + $0x103] sm:$0xff] }
  0x49   : > { %5750 = vmatprep.mubr.msk.f32.mxu1 %vm306_vm3, %v291_v21  ;;  %v242_v21 = vld [vmem:[%s6793_s10 + $0x88] sm:$0xff] }
  0x4b   : > { %5876 = vmatmul.mubr.msk.f32.gmra.mrb[28].mxu0 %vm306_vm3, %v1081_v57  ;;  %v1523_v57 = vld [vmem:[%s6793_s10 + $0xa3] sm:$0xff] }
  0x4c   : > { %5878 = vmatprep.mubr.msk.f32.mxu0 %vm306_vm3, %v1082_v58  ;;  %5751 = vmatmul.mubr.msk.f32.gmra.mrb[26].mxu1 %vm306_vm3, %v292_v24  ;;  %v230_v58 = vld [vmem:[%s6793_s10 + $0x28] sm:$0xff]  ;;  %v1537_v24 = vld [vmem:[%s6793_s10 + $0x113] sm:$0xff] }
  0x4f   : > { %5879 = vmatmul.mubr.msk.f32.gmra.mrb[30].mxu0 %vm306_vm3, %v1083_v61  ;;  %v1525_v61 = vld [vmem:[%s6793_s10 + $0xb3] sm:$0xff] }
  0x50   : > { %5881 = vmatprep.mubr.msk.f32.mxu0 %vm306_vm3, %v1084_v62  ;;  %v232_v62 = vld [vmem:[%s6793_s10 + $0x38] sm:$0xff] }
  0x53   : > { %5882 = vmatmul.mubr.msk.f32.gmra.mrb[32].mxu0 %vm306_vm3, %v1085_v1  ;;  %v1527_v1 = vld [vmem:[%s6793_s10 + $0xc3] sm:$0xff] }
  0x54   : > { %5884 = vmatprep.mubr.msk.f32.mxu0 %vm306_vm3, %v1086_v3  ;;  %v234_v3 = vld [vmem:[%s6793_s10 + $0x48] sm:$0xff] }
  0x57   : > { %5885 = vmatmul.mubr.msk.f32.gmra.mrb[34].mxu0 %vm306_vm3, %v1087_v6  ;;  %v1529_v6 = vld [vmem:[%s6793_s10 + $0xd3] sm:$0xff] }
  0x58   : > { %5887 = vmatprep.mubr.msk.f32.mxu0 %vm306_vm3, %v1088_v7  ;;  %v236_v7 = vld [vmem:[%s6793_s10 + $0x58] sm:$0xff] }
  0x5b   : > { %5888 = vmatmul.mubr.msk.f32.gmra.mrb[36].mxu0 %vm306_vm3, %v1089_v10  ;;  %v1531_v10 = vld [vmem:[%s6793_s10 + $0xe3] sm:$0xff] }
  0x5c   : > { %5894 = vmatprep.mubr.msk.f32.mxu0 %vm306_vm3, %v1503_v11  ;;  %v238_v11 = vld [vmem:[%s6793_s10 + $0x68] sm:$0xff] }
  0x5f   : > { %5895 = vmatmul.mubr.msk.f32.vlgmr.msra.gmra.mrb[0].mxu0 %vm306_vm3, %v1504_v17  ;;  %v241_v17 = vld [vmem:[%s6793_s10 + $0x80] sm:$0xff] }
  0x60   : > { %6358 = vmatpush3.bf16.msk.msra.mxu0 %vm6765_vm2, %v6798_v12  ;;  %5897 = vmatprep.mubr.msk.f32.mxu0 %vm306_vm3, %v1505_v18  ;;  %v293_v12 = vld [vmem:[%s6793_s10 + $0xe1] sm:$0xff] }
  0x61   : > { %6361 = vmatprep.subr.msk.bf16.mxu0 %vm6765_vm2, %v6946_v19  ;;  %5753 = vmatprep.mubr.msk.f32.mxu1 %vm306_vm3, %v293_v12  ;;  %v1534_v18 = vld [vmem:[%s6793_s10 + $0xfb] sm:$0xff] }
  0x62   : > { %5754 = vmatmul.mubr.msk.f32.gmra.mrb[28].mxu1 %vm306_vm3, %v294_v27  ;;  %v244_v12 = vld [vmem:[%s6793_s10 + $0x98] sm:$0xff]  ;;  %v1539_v27 = vld [vmem:[%s6793_s10 + $0x123] sm:$0xff] }
  0x63   : > { %5898 = vmatmul.mubr.msk.f32.gmra.mrb[2].mxu0 %vm306_vm3, %v1506_v22  ;;  %5756 = vmatprep.mubr.msk.f32.mxu1 %vm306_vm3, %v295_v28  ;;  %v243_v22 = vld [vmem:[%s6793_s10 + $0x90] sm:$0xff]  ;;  %v246_v28 = vld [vmem:[%s6793_s10 + $0xa8] sm:$0xff] }
  0x64   : > { %5900 = vmatprep.mubr.msk.f32.mxu0 %vm306_vm3, %v1507_v23  ;;  %v1536_v23 = vld [vmem:[%s6793_s10 + $0x10b] sm:$0xff] }
  0x66   : > { %5757 = vmatmul.mubr.msk.f32.gmra.mrb[30].mxu1 %vm306_vm3, %v296_v31  ;;  %v1954_v31 = vld [vmem:[%s6793_s10 + $0x4] sm:$0xff] }
  0x67   : > { %5901 = vmatmul.mubr.msk.f32.gmra.mrb[4].mxu0 %vm306_vm3, %v1508_v25  ;;  %5759 = vmatprep.mubr.msk.f32.mxu1 %vm306_vm3, %v297_v32  ;;  %v245_v25 = vld [vmem:[%s6793_s10 + $0xa0] sm:$0xff] }
  0x68   : > { %5903 = vmatprep.mubr.msk.f32.mxu0 %vm306_vm3, %v1509_v26  ;;  %v1538_v26 = vld [vmem:[%s6793_s10 + $0x11b] sm:$0xff] }
  0x69   : > { %v5134_v32 = vld [vmem:[%s7863_s1 + $0x60] sm:$0xff] }
  0x6a   : > { %5760 = vmatmul.mubr.msk.f32.gmra.mrb[32].mxu1 %vm306_vm3, %v298_v35  ;;  %v249_v35 = vld [vmem:[%s6793_s10 + $0xc0] sm:$0xff] }
  0x6b   : > { %5904 = vmatmul.mubr.msk.f32.gmra.mrb[6].mxu0 %vm306_vm3, %v1510_v29  ;;  %5762 = vmatprep.mubr.msk.f32.mxu1 %vm306_vm3, %v299_v36  ;;  %v247_v29 = vld [vmem:[%s6793_s10 + $0xb0] sm:$0xff] }
  0x6c   : > { %5906 = vmatprep.mubr.msk.f32.mxu0 %vm306_vm3, %v1511_v30  ;;  %v1540_v30 = vld [vmem:[%s6793_s10 + $0x12b] sm:$0xf] }
  0x6d   : > { %v1955_v36 = vld [vmem:[%s6793_s10 + $0xc] sm:$0xff] }
  0x6e   : > { %5763 = vmatmul.mubr.msk.f32.gmra.mrb[34].mxu1 %vm306_vm3, %v300_v42  ;;  %v1958_v42 = vld [vmem:[%s6793_s10 + $0x24] sm:$0xff] }
  0x6f   : > { %5907 = vmatmul.mubr.msk.f32.gmra.mrb[8].mxu0 %vm306_vm3, %v1512_v33  ;;  %5765 = vmatprep.mubr.msk.f32.mxu1 %vm306_vm3, %v301_v43  ;;  %v5135_v33 = vld [vmem:[%s7863_s1 + $0x68] sm:$0xf]  ;;  %v252_v43 = vld [vmem:[%s6793_s10 + $0xd8] sm:$0xff] }
  0x70   : > { %5909 = vmatprep.mubr.msk.f32.mxu0 %vm306_vm3, %v1513_v34  ;;  %v248_v34 = vld [vmem:[%s6793_s10 + $0xb8] sm:$0xff] }
  0x72   : > { %5766 = vmatmul.mubr.msk.f32.gmra.mrb[36].mxu1 %vm306_vm3, %v302_v46  ;;  %v254_v46 = vld [vmem:[%s6793_s10 + $0xe8] sm:$0xff] }
  0x73   : > { %5910 = vmatmul.mubr.msk.f32.gmra.mrb[10].mxu0 %vm306_vm3, %v1514_v38  ;;  %5772 = vmatprep.mubr.msk.f32.mxu1 %vm306_vm3, %v225_v47  ;;  %v7122_v38 = vpack.c.bf16 %v5135_v33, %v5134_v32  ;;  %v255_v47 = vld [vmem:[%s6793_s10 + $0xf0] sm:$0xff] }
  0x74   : > { %5912 = vmatprep.mubr.msk.f32.mxu0 %vm306_vm3, %v1515_v40  ;;  %v251_v40 = vld [vmem:[%s6793_s10 + $0xd0] sm:$0xff] }
  0x75   : > { %v2414_v32 = vld [vmem:[%s6793_s10 + $0x4d] sm:$0xff]  ;;  %v2415_v33 = vld [vmem:[%s6793_s10 + $0x55] sm:$0xff] }
  0x76   : > { %5773 = vmatmul.mubr.msk.f32.vlgmr.msra.gmra.mrb[0].mxu1 %vm306_vm3, %v226_v50  ;;  %v256_v50 = vld [vmem:[%s6793_s10 + $0xf8] sm:$0xff] }
  0x77   : > { %5913 = vmatmul.mubr.msk.f32.gmra.mrb[12].mxu0 %vm306_vm3, %v1516_v44  ;;  %5775 = vmatprep.mubr.msk.f32.mxu1 %vm306_vm3, %v227_v51  ;;  %v1959_v44 = vld [vmem:[%s6793_s10 + $0x2c] sm:$0xff]  ;;  %v257_v51 = vld [vmem:[%s6793_s10 + $0x100] sm:$0xff] }
  0x78   : > { %5915 = vmatprep.mubr.msk.f32.mxu0 %vm306_vm3, %v1517_v45  ;;  %v1960_v45 = vld [vmem:[%s6793_s10 + $0x34] sm:$0xff] }
  0x7a   : > { %5776 = vmatmul.mubr.msk.f32.gmra.mrb[2].mxu1 %vm306_vm3, %v228_v54  ;;  %v258_v54 = vld [vmem:[%s6793_s10 + $0x108] sm:$0xff] }
  0x7b   : > { %5916 = vmatmul.mubr.msk.f32.gmra.mrb[14].mxu0 %vm306_vm3, %v1518_v48  ;;  %5778 = vmatprep.mubr.msk.f32.mxu1 %vm306_vm3, %v229_v55  ;;  %v1961_v48 = vld [vmem:[%s6793_s10 + $0x3c] sm:$0xff]  ;;  %v259_v55 = vld [vmem:[%s6793_s10 + $0x110] sm:$0xff] }
  0x7c   : > { %5918 = vmatprep.mubr.msk.f32.mxu0 %vm306_vm3, %v1519_v49  ;;  %v1962_v49 = vld [vmem:[%s6793_s10 + $0x44] sm:$0xff] }
  0x7e   : > { %5779 = vmatmul.mubr.msk.f32.gmra.mrb[4].mxu1 %vm306_vm3, %v230_v58  ;;  %v260_v58 = vld [vmem:[%s6793_s10 + $0x118] sm:$0xff] }
  0x7f   : > { %5919 = vmatmul.mubr.msk.f32.gmra.mrb[16].mxu0 %vm306_vm3, %v1520_v52  ;;  %5781 = vmatprep.mubr.msk.f32.mxu1 %vm306_vm3, %v231_v59  ;;  %v1963_v52 = vld [vmem:[%s6793_s10 + $0x4c] sm:$0xff]  ;;  %v261_v59 = vld [vmem:[%s6793_s10 + $0x120] sm:$0xff] }
  0x80   : > { %5921 = vmatprep.mubr.msk.f32.mxu0 %vm306_vm3, %v1521_v53  ;;  %v1964_v53 = vld [vmem:[%s6793_s10 + $0x54] sm:$0xff] }
  0x82   : > { %5782 = vmatmul.mubr.msk.f32.gmra.mrb[6].mxu1 %vm306_vm3, %v232_v62  ;;  %v262_v62 = vld [vmem:[%s6793_s10 + $0x128] sm:$0xf] }
  0x83   : > { %5922 = vmatmul.mubr.msk.f32.gmra.mrb[18].mxu0 %vm306_vm3, %v1522_v56  ;;  %5784 = vmatprep.mubr.msk.f32.mxu1 %vm306_vm3, %v233_v63  ;;  %v1965_v56 = vld [vmem:[%s6793_s10 + $0x5c] sm:$0xff] }
  0x84   : > { %5924 = vmatprep.mubr.msk.f32.mxu0 %vm306_vm3, %v1523_v57  ;;  %v1966_v57 = vld [vmem:[%s6793_s10 + $0x64] sm:$0xff]  ;;  %v1969_v63 = vld [vmem:[%s6793_s10 + $0x7c] sm:$0xff] }
  0x86   : > { %5785 = vmatmul.mubr.msk.f32.gmra.mrb[8].mxu1 %vm306_vm3, %v234_v3  ;;  %v1972_v3 = vld [vmem:[%s6793_s10 + $0x94] sm:$0xff] }
  0x87   : > { %5925 = vmatmul.mubr.msk.f32.gmra.mrb[20].mxu0 %vm306_vm3, %v1524_v60  ;;  %5787 = vmatprep.mubr.msk.f32.mxu1 %vm306_vm3, %v235_v4  ;;  %v1967_v60 = vld [vmem:[%s6793_s10 + $0x6c] sm:$0xff]  ;;  %v1973_v4 = vld [vmem:[%s6793_s10 + $0x9c] sm:$0xff] }
  0x88   : > { %5927 = vmatprep.mubr.msk.f32.mxu0 %vm306_vm3, %v1525_v61  ;;  %v1968_v61 = vld [vmem:[%s6793_s10 + $0x74] sm:$0xff] }
  0x8a   : > { %5788 = vmatmul.mubr.msk.f32.gmra.mrb[10].mxu1 %vm306_vm3, %v236_v7  ;;  %v1976_v7 = vld [vmem:[%s6793_s10 + $0xb4] sm:$0xff] }
  0x8b   : > { %5928 = vmatmul.mubr.msk.f32.gmra.mrb[22].mxu0 %vm306_vm3, %v1526_v0  ;;  %5790 = vmatprep.mubr.msk.f32.mxu1 %vm306_vm3, %v237_v8  ;;  %v1970_v0 = vld [vmem:[%s6793_s10 + $0x84] sm:$0xff]  ;;  %v1977_v8 = vld [vmem:[%s6793_s10 + $0xbc] sm:$0xff] }
  0x8c   : > { %5930 = vmatprep.mubr.msk.f32.mxu0 %vm306_vm3, %v1527_v1  ;;  %v1971_v1 = vld [vmem:[%s6793_s10 + $0x8c] sm:$0xff] }
  0x8e   : > { %5791 = vmatmul.mubr.msk.f32.gmra.mrb[12].mxu1 %vm306_vm3, %v238_v11  ;;  %v1980_v11 = vld [vmem:[%s6793_s10 + $0xd4] sm:$0xff] }
  0x8f   : > { %5931 = vmatmul.mubr.msk.f32.gmra.mrb[24].mxu0 %vm306_vm3, %v1528_v5  ;;  %5793 = vmatprep.mubr.msk.f32.mxu1 %vm306_vm3, %v239_v13  ;;  %v1974_v5 = vld [vmem:[%s6793_s10 + $0xa4] sm:$0xff]  ;;  %v1981_v13 = vld [vmem:[%s6793_s10 + $0xdc] sm:$0xff] }
  0x90   : > { %5933 = vmatprep.mubr.msk.f32.mxu0 %vm306_vm3, %v1529_v6  ;;  %v1975_v6 = vld [vmem:[%s6793_s10 + $0xac] sm:$0xff] }
  0x92   : > { %5794 = vmatmul.mubr.msk.f32.gmra.mrb[14].mxu1 %vm306_vm3, %v240_v16  ;;  %v1984_v16 = vld [vmem:[%s6793_s10 + $0xf4] sm:$0xff] }
  0x93   : > { %5934 = vmatmul.mubr.msk.f32.gmra.mrb[26].mxu0 %vm306_vm3, %v1530_v9  ;;  %5796 = vmatprep.mubr.msk.f32.mxu1 %vm306_vm3, %v241_v17  ;;  %v1978_v9 = vld [vmem:[%s6793_s10 + $0xc4] sm:$0xff]  ;;  %v1985_v17 = vld [vmem:[%s6793_s10 + $0xfc] sm:$0xff] }
  0x94   : > { %5936 = vmatprep.mubr.msk.f32.mxu0 %vm306_vm3, %v1531_v10  ;;  %v1979_v10 = vld [vmem:[%s6793_s10 + $0xcc] sm:$0xff] }
  0x96   : > { %5797 = vmatmul.mubr.msk.f32.gmra.mrb[16].mxu1 %vm306_vm3, %v242_v21  ;;  %v1988_v21 = vld [vmem:[%s6793_s10 + $0x114] sm:$0xff] }
  0x97   : > { %5937 = vmatmul.mubr.msk.f32.gmra.mrb[28].mxu0 %vm306_vm3, %v1532_v14  ;;  %5799 = vmatprep.mubr.msk.f32.mxu1 %vm306_vm3, %v243_v22  ;;  %v1982_v14 = vld [vmem:[%s6793_s10 + $0xe4] sm:$0xff]  ;;  %v1989_v22 = vld [vmem:[%s6793_s10 + $0x11c] sm:$0xff] }
  0x98   : > { %5939 = vmatprep.mubr.msk.f32.mxu0 %vm306_vm3, %v1533_v15  ;;  %v1983_v15 = vld [vmem:[%s6793_s10 + $0xec] sm:$0xff] }
  0x9a   : > { %5800 = vmatmul.mubr.msk.f32.gmra.mrb[18].mxu1 %vm306_vm3, %v244_v12  ;;  %v2405_v12 = vld [vmem:[%s6793_s10 + $0x5] sm:$0xff] }
  0x9b   : > { %5940 = vmatmul.mubr.msk.f32.gmra.mrb[30].mxu0 %vm306_vm3, %v1534_v18  ;;  %5802 = vmatprep.mubr.msk.f32.mxu1 %vm306_vm3, %v245_v25  ;;  %v1986_v18 = vld [vmem:[%s6793_s10 + $0x104] sm:$0xff]  ;;  %v2406_v25 = vld [vmem:[%s6793_s10 + $0xd] sm:$0xff] }
  0x9c   : > { %5942 = vmatprep.mubr.msk.f32.mxu0 %vm306_vm3, %v1535_v20  ;;  %v1987_v20 = vld [vmem:[%s6793_s10 + $0x10c] sm:$0xff] }
  0x9e   : > { %5803 = vmatmul.mubr.msk.f32.gmra.mrb[20].mxu1 %vm306_vm3, %v246_v28  ;;  %v2409_v28 = vld [vmem:[%s6793_s10 + $0x25] sm:$0xff] }
  0x9f   : > { %5943 = vmatmul.mubr.msk.f32.gmra.mrb[32].mxu0 %vm306_vm3, %v1536_v23  ;;  %5805 = vmatprep.mubr.msk.f32.mxu1 %vm306_vm3, %v247_v29  ;;  %v1990_v23 = vld [vmem:[%s6793_s10 + $0x124] sm:$0xff]  ;;  %v2410_v29 = vld [vmem:[%s6793_s10 + $0x2d] sm:$0xff] }
  0xa0   : > { %5945 = vmatprep.mubr.msk.f32.mxu0 %vm306_vm3, %v1537_v24  ;;  %v1991_v24 = vld [vmem:[%s6793_s10 + $0x12c] sm:$0xf] }
  0xa2   : > { %5806 = vmatmul.mubr.msk.f32.gmra.mrb[22].mxu1 %vm306_vm3, %v248_v34  ;;  %v2416_v34 = vld [vmem:[%s6793_s10 + $0x5d] sm:$0xff] }
  0xa3   : > { %5946 = vmatmul.mubr.msk.f32.gmra.mrb[34].mxu0 %vm306_vm3, %v1538_v26  ;;  %5808 = vmatprep.mubr.msk.f32.mxu1 %vm306_vm3, %v249_v35  ;;  %v2407_v26 = vld [vmem:[%s6793_s10 + $0x15] sm:$0xff]  ;;  %v2417_v35 = vld [vmem:[%s6793_s10 + $0x65] sm:$0xff] }
  0xa4   : > { %5948 = vmatprep.mubr.msk.f32.mxu0 %vm306_vm3, %v1539_v27  ;;  %v2408_v27 = vld [vmem:[%s6793_s10 + $0x1d] sm:$0xff] }
  0xa6   : > { %5809 = vmatmul.mubr.msk.f32.gmra.mrb[24].mxu1 %vm306_vm3, %v250_v39  ;;  %v2418_v39 = vld [vmem:[%s6793_s10 + $0x6d] sm:$0xff] }
  0xa7   : > { %5949 = vmatmul.mubr.msk.f32.gmra.mrb[36].mxu0 %vm306_vm3, %v1540_v30  ;;  %5811 = vmatprep.mubr.msk.f32.mxu1 %vm306_vm3, %v251_v40  ;;  %v2411_v30 = vld [vmem:[%s6793_s10 + $0x35] sm:$0xff] }
  0xa8   : > { %5955 = vmatprep.mubr.msk.f32.mxu0 %vm306_vm3, %v1954_v31  ;;  %v2413_v31 = vld [vmem:[%s6793_s10 + $0x45] sm:$0xff] }
  0xaa   : > { %5812 = vmatmul.mubr.msk.f32.gmra.mrb[26].mxu1 %vm306_vm3, %v252_v43 }
  0xab   : > { %5956 = vmatmul.mubr.msk.f32.vlgmr.msra.gmra.mrb[0].mxu0 %vm306_vm3, %v1955_v36  ;;  %v5176_v36 = vld [vmem:[%s7865_s3 + $0x20] sm:$0xff] }
  0xac   : > { %6364 = vmatpush3.bf16.msk.msra.mxu0 %vm6765_vm2, %v6946_v19  ;;  %5958 = vmatprep.mubr.msk.f32.mxu0 %vm306_vm3, %v1956_v37  ;;  %v253_v19 = vld [vmem:[%s6793_s10 + $0xe0] sm:$0xff]  ;;  %v5177_v37 = vld [vmem:[%s7865_s3 + $0x28] sm:$0xff] }
  0xad   : > { %6367 = vmatprep.subr.msk.bf16.mxu0 %vm6765_vm2, %v7122_v38  ;;  %5814 = vmatprep.mubr.msk.f32.mxu1 %vm306_vm3, %v253_v19  ;;  %v6371_v40 = vpack.c.bf16 %v5177_v37, %v5176_v36  ;;  %v2420_v19 = vld [vmem:[%s6793_s10 + $0x7d] sm:$0xff]  ;;  %v2877_v36 = vld [vmem:[%s6793_s10 + $0xae] sm:$0xff] }
  0xae   : > { %5815 = vmatmul.mubr.msk.f32.gmra.mrb[28].mxu1 %vm306_vm3, %v254_v46  ;;  %v2423_v46 = vld [vmem:[%s6793_s10 + $0x95] sm:$0xff] }
  0xaf   : > { %5959 = vmatmul.mubr.msk.f32.gmra.mrb[2].mxu0 %vm306_vm3, %v1957_v41  ;;  %5817 = vmatprep.mubr.msk.f32.mxu1 %vm306_vm3, %v255_v47  ;;  %v5179_v41 = vld [vmem:[%s7865_s3 + $0x38] sm:$0xff] }
  0xb0   : > { %5961 = vmatprep.mubr.msk.f32.mxu0 %vm306_vm3, %v1958_v42  ;;  %v2419_v42 = vld [vmem:[%s6793_s10 + $0x75] sm:$0xff]  ;;  %6372 = vmatprep.subr.bf16.mxu1 %v6371_v40  ;;  %v2424_v47 = vld [vmem:[%s6793_s10 + $0x9d] sm:$0xff] }
  0xb1   : > { %6374 = vmatpush3.bf16.msra.mxu1 %v6371_v40  ;;  %v2879_v40 = vld [vmem:[%s6793_s10 + $0xbe] sm:$0xff] }
  0xb2   : > { %5818 = vmatmul.mubr.msk.f32.gmra.mrb[30].mxu1 %vm306_vm3, %v256_v50  ;;  %v2427_v50 = vld [vmem:[%s6793_s10 + $0xb5] sm:$0xff] }
  0xb3   : > { %5962 = vmatmul.mubr.msk.f32.gmra.mrb[4].mxu0 %vm306_vm3, %v1959_v44  ;;  %5820 = vmatprep.mubr.msk.f32.mxu1 %vm306_vm3, %v257_v51  ;;  %v2421_v44 = vld [vmem:[%s6793_s10 + $0x85] sm:$0xff]  ;;  %v2428_v51 = vld [vmem:[%s6793_s10 + $0xbd] sm:$0xff] }
  0xb4   : > { %5964 = vmatprep.mubr.msk.f32.mxu0 %vm306_vm3, %v1960_v45  ;;  %v2422_v45 = vld [vmem:[%s6793_s10 + $0x8d] sm:$0xff] }
  0xb6   : > { %5821 = vmatmul.mubr.msk.f32.gmra.mrb[32].mxu1 %vm306_vm3, %v258_v54  ;;  %v2431_v54 = vld [vmem:[%s6793_s10 + $0xd5] sm:$0xff] }
  0xb7   : > { %5965 = vmatmul.mubr.msk.f32.gmra.mrb[6].mxu0 %vm306_vm3, %v1961_v48  ;;  %5823 = vmatprep.mubr.msk.f32.mxu1 %vm306_vm3, %v259_v55  ;;  %v2425_v48 = vld [vmem:[%s6793_s10 + $0xa5] sm:$0xff]  ;;  %v2432_v55 = vld [vmem:[%s6793_s10 + $0xdd] sm:$0xff] }
  0xb8   : > { %5967 = vmatprep.mubr.msk.f32.mxu0 %vm306_vm3, %v1962_v49  ;;  %v2426_v49 = vld [vmem:[%s6793_s10 + $0xad] sm:$0xff] }
  0xba   : > { %5824 = vmatmul.mubr.msk.f32.gmra.mrb[34].mxu1 %vm306_vm3, %v260_v58  ;;  %v2435_v58 = vld [vmem:[%s6793_s10 + $0xf5] sm:$0xff] }
  0xbb   : > { %5968 = vmatmul.mubr.msk.f32.gmra.mrb[8].mxu0 %vm306_vm3, %v1963_v52  ;;  %5826 = vmatprep.mubr.msk.f32.mxu1 %vm306_vm3, %v261_v59  ;;  %v2429_v52 = vld [vmem:[%s6793_s10 + $0xc5] sm:$0xff]  ;;  %v2436_v59 = vld [vmem:[%s6793_s10 + $0xfd] sm:$0xff] }
  0xbc   : > { %5970 = vmatprep.mubr.msk.f32.mxu0 %vm306_vm3, %v1964_v53  ;;  %v2430_v53 = vld [vmem:[%s6793_s10 + $0xcd] sm:$0xff] }
  0xbe   : > { %5827 = vmatmul.mubr.msk.f32.gmra.mrb[36].mxu1 %vm306_vm3, %v262_v62  ;;  %v2439_v62 = vld [vmem:[%s6793_s10 + $0x115] sm:$0xff] }
  0xbf   : > { %5971 = vmatmul.mubr.msk.f32.gmra.mrb[10].mxu0 %vm306_vm3, %v1965_v56  ;;  %v2433_v56 = vld [vmem:[%s6793_s10 + $0xe5] sm:$0xff] }
  0xc0   : > { %5973 = vmatprep.mubr.msk.f32.mxu0 %vm306_vm3, %v1966_v57  ;;  %v2434_v57 = vld [vmem:[%s6793_s10 + $0xed] sm:$0xff] }
  0xc3   : > { %5974 = vmatmul.mubr.msk.f32.gmra.mrb[12].mxu0 %vm306_vm3, %v1967_v60  ;;  %v2437_v60 = vld [vmem:[%s6793_s10 + $0x105] sm:$0xff] }
  0xc4   : > { %5976 = vmatprep.mubr.msk.f32.mxu0 %vm306_vm3, %v1968_v61  ;;  %v2438_v61 = vld [vmem:[%s6793_s10 + $0x10d] sm:$0xff] }
  0xc7   : > { %5977 = vmatmul.mubr.msk.f32.gmra.mrb[14].mxu0 %vm306_vm3, %v1969_v63  ;;  %v2440_v63 = vld [vmem:[%s6793_s10 + $0x11d] sm:$0xff] }
  0xc8   : > { %5979 = vmatprep.mubr.msk.f32.mxu0 %vm306_vm3, %v1970_v0  ;;  %v2441_v0 = vld [vmem:[%s6793_s10 + $0x125] sm:$0xff] }
  0xcb   : > { %5980 = vmatmul.mubr.msk.f32.gmra.mrb[16].mxu0 %vm306_vm3, %v1971_v1  ;;  %v2442_v1 = vld [vmem:[%s6793_s10 + $0x12d] sm:$0xf] }
  0xcc   : > { %5982 = vmatprep.mubr.msk.f32.mxu0 %vm306_vm3, %v1972_v3  ;;  %v2856_v3 = vld [vmem:[%s6793_s10 + $0x6] sm:$0xff] }
  0xcf   : > { %5983 = vmatmul.mubr.msk.f32.gmra.mrb[18].mxu0 %vm306_vm3, %v1973_v4  ;;  %v2857_v4 = vld [vmem:[%s6793_s10 + $0xe] sm:$0xff] }
  0xd0   : > { %5985 = vmatprep.mubr.msk.f32.mxu0 %vm306_vm3, %v1974_v5  ;;  %v2858_v5 = vld [vmem:[%s6793_s10 + $0x16] sm:$0xff] }
  0xd3   : > { %5986 = vmatmul.mubr.msk.f32.gmra.mrb[20].mxu0 %vm306_vm3, %v1975_v6  ;;  %v2859_v6 = vld [vmem:[%s6793_s10 + $0x1e] sm:$0xff] }
  0xd4   : > { %5988 = vmatprep.mubr.msk.f32.mxu0 %vm306_vm3, %v1976_v7  ;;  %v2860_v7 = vld [vmem:[%s6793_s10 + $0x26] sm:$0xff] }
  0xd7   : > { %5989 = vmatmul.mubr.msk.f32.gmra.mrb[22].mxu0 %vm306_vm3, %v1977_v8  ;;  %v2861_v8 = vld [vmem:[%s6793_s10 + $0x2e] sm:$0xff] }
  0xd8   : > { %5991 = vmatprep.mubr.msk.f32.mxu0 %vm306_vm3, %v1978_v9  ;;  %v2862_v9 = vld [vmem:[%s6793_s10 + $0x36] sm:$0xff] }
  0xdb   : > { %5992 = vmatmul.mubr.msk.f32.gmra.mrb[24].mxu0 %vm306_vm3, %v1979_v10  ;;  %v2863_v10 = vld [vmem:[%s6793_s10 + $0x3e] sm:$0xff] }
  0xdc   : > { %5994 = vmatprep.mubr.msk.f32.mxu0 %vm306_vm3, %v1980_v11  ;;  %v2864_v11 = vld [vmem:[%s6793_s10 + $0x46] sm:$0xff] }
  0xdf   : > { %5995 = vmatmul.mubr.msk.f32.gmra.mrb[26].mxu0 %vm306_vm3, %v1981_v13  ;;  %v2865_v13 = vld [vmem:[%s6793_s10 + $0x4e] sm:$0xff] }
  0xe0   : > { %5997 = vmatprep.mubr.msk.f32.mxu0 %vm306_vm3, %v1982_v14 }
  0xe3   : > { %5998 = vmatmul.mubr.msk.f32.gmra.mrb[28].mxu0 %vm306_vm3, %v1983_v15  ;;  %v2866_v15 = vld [vmem:[%s6793_s10 + $0x56] sm:$0xff] }
  0xe4   : > { %6000 = vmatprep.mubr.msk.f32.mxu0 %vm306_vm3, %v1984_v16 }
  0xe7   : > { %6001 = vmatmul.mubr.msk.f32.gmra.mrb[30].mxu0 %vm306_vm3, %v1985_v17  ;;  %v2867_v17 = vld [vmem:[%s6793_s10 + $0x5e] sm:$0xff] }
  0xe8   : > { %6003 = vmatprep.mubr.msk.f32.mxu0 %vm306_vm3, %v1986_v18 }
  0xeb   : > { %6004 = vmatmul.mubr.msk.f32.gmra.mrb[32].mxu0 %vm306_vm3, %v1987_v20  ;;  %v2868_v20 = vld [vmem:[%s6793_s10 + $0x66] sm:$0xff] }
  0xec   : > { %6006 = vmatprep.mubr.msk.f32.mxu0 %vm306_vm3, %v1988_v21 }
  0xef   : > { %6007 = vmatmul.mubr.msk.f32.gmra.mrb[34].mxu0 %vm306_vm3, %v1989_v22  ;;  %v2869_v22 = vld [vmem:[%s6793_s10 + $0x6e] sm:$0xff] }
  0xf0   : > { %6009 = vmatprep.mubr.msk.f32.mxu0 %vm306_vm3, %v1990_v23 }
  0xf3   : > { %6010 = vmatmul.mubr.msk.f32.gmra.mrb[36].mxu0 %vm306_vm3, %v1991_v24  ;;  %v2870_v24 = vld [vmem:[%s6793_s10 + $0x76] sm:$0xff] }
  0xf4   : > { %6016 = vmatprep.mubr.msk.f32.mxu0 %vm306_vm3, %v2405_v12 }
  0xf7   : > { %6017 = vmatmul.mubr.msk.f32.vlgmr.msra.gmra.mrb[0].mxu0 %vm306_vm3, %v2406_v25  ;;  %v2871_v25 = vld [vmem:[%s6793_s10 + $0x7e] sm:$0xff] }
  0xf8   : > { %6370 = vmatpush3.bf16.msk.msra.mxu0 %vm6765_vm2, %v7122_v38  ;;  %6019 = vmatprep.mubr.msk.f32.mxu0 %vm306_vm3, %v2407_v26  ;;  %v5178_v38 = vld [vmem:[%s7865_s3 + $0x30] sm:$0xff] }
  0xf9   : > { %v6375_v43 = vpack.c.bf16 %v5179_v41, %v5178_v38  ;;  %v2878_v38 = vld [vmem:[%s6793_s10 + $0xb6] sm:$0xff] }
  0xfb   : > { %6020 = vmatmul.mubr.msk.f32.gmra.mrb[2].mxu0 %vm306_vm3, %v2408_v27  ;;  %6376 = vmatprep.subr.bf16.mxu1 %v6375_v43  ;;  %v2872_v27 = vld [vmem:[%s6793_s10 + $0x86] sm:$0xff] }
  0xfc   : > { %6022 = vmatprep.mubr.msk.f32.mxu0 %vm306_vm3, %v2409_v28  ;;  %6378 = vmatpush3.bf16.msra.mxu1 %v6375_v43 }
  0xff   : > { %6023 = vmatmul.mubr.msk.f32.gmra.mrb[4].mxu0 %vm306_vm3, %v2410_v29  ;;  %v2873_v29 = vld [vmem:[%s6793_s10 + $0x8e] sm:$0xff] }
 0x100   : > { %6025 = vmatprep.mubr.msk.f32.mxu0 %vm306_vm3, %v2411_v30 }
 0x103   : > { %6026 = vmatmul.mubr.msk.f32.gmra.mrb[6].mxu0 %vm306_vm3, %v2412_v2  ;;  %v2874_v2 = vld [vmem:[%s6793_s10 + $0x96] sm:$0xff] }
 0x104   : > { %6028 = vmatprep.mubr.msk.f32.mxu0 %vm306_vm3, %v2413_v31 }
 0x107   : > { %6029 = vmatmul.mubr.msk.f32.gmra.mrb[8].mxu0 %vm306_vm3, %v2414_v32  ;;  %v2875_v32 = vld [vmem:[%s6793_s10 + $0x9e] sm:$0xff] }
 0x108   : > { %6031 = vmatprep.mubr.msk.f32.mxu0 %vm306_vm3, %v2415_v33 }
 0x10b   : > { %6032 = vmatmul.mubr.msk.f32.gmra.mrb[10].mxu0 %vm306_vm3, %v2416_v34  ;;  %v2876_v34 = vld [vmem:[%s6793_s10 + $0xa6] sm:$0xff] }
 0x10c   : > { %6034 = vmatprep.mubr.msk.f32.mxu0 %vm306_vm3, %v2417_v35 }
 0x10f   : > { %6035 = vmatmul.mubr.msk.f32.gmra.mrb[12].mxu0 %vm306_vm3, %v2418_v39 }
 0x110   : > { %6037 = vmatprep.mubr.msk.f32.mxu0 %vm306_vm3, %v2419_v42  ;;  %v2880_v42 = vld [vmem:[%s6793_s10 + $0xc6] sm:$0xff] }
 0x113   : > { %6038 = vmatmul.mubr.msk.f32.gmra.mrb[14].mxu0 %vm306_vm3, %v2420_v19  ;;  %v2881_v19 = vld [vmem:[%s6793_s10 + $0xce] sm:$0xff] }
 0x114   : > { %6040 = vmatprep.mubr.msk.f32.mxu0 %vm306_vm3, %v2421_v44 }
 0x117   : > { %6041 = vmatmul.mubr.msk.f32.gmra.mrb[16].mxu0 %vm306_vm3, %v2422_v45  ;;  %v2882_v45 = vld [vmem:[%s6793_s10 + $0xd6] sm:$0xff] }
 0x118   : > { %6043 = vmatprep.mubr.msk.f32.mxu0 %vm306_vm3, %v2423_v46 }
 0x11b   : > { %6044 = vmatmul.mubr.msk.f32.gmra.mrb[18].mxu0 %vm306_vm3, %v2424_v47  ;;  %v2883_v47 = vld [vmem:[%s6793_s10 + $0xde] sm:$0xff] }
 0x11c   : > { %6046 = vmatprep.mubr.msk.f32.mxu0 %vm306_vm3, %v2425_v48 }
 0x11f   : > { %6047 = vmatmul.mubr.msk.f32.gmra.mrb[20].mxu0 %vm306_vm3, %v2426_v49  ;;  %v2884_v49 = vld [vmem:[%s6793_s10 + $0xe6] sm:$0xff] }
 0x120   : > { %6049 = vmatprep.mubr.msk.f32.mxu0 %vm306_vm3, %v2427_v50 }
 0x123   : > { %6050 = vmatmul.mubr.msk.f32.gmra.mrb[22].mxu0 %vm306_vm3, %v2428_v51  ;;  %v2885_v51 = vld [vmem:[%s6793_s10 + $0xee] sm:$0xff] }
 0x124   : > { %6052 = vmatprep.mubr.msk.f32.mxu0 %vm306_vm3, %v2429_v52 }
 0x127   : > { %6053 = vmatmul.mubr.msk.f32.gmra.mrb[24].mxu0 %vm306_vm3, %v2430_v53  ;;  %v2886_v53 = vld [vmem:[%s6793_s10 + $0xf6] sm:$0xff] }
 0x128   : > { %6055 = vmatprep.mubr.msk.f32.mxu0 %vm306_vm3, %v2431_v54 }
 0x12b   : > { %6056 = vmatmul.mubr.msk.f32.gmra.mrb[26].mxu0 %vm306_vm3, %v2432_v55  ;;  %v2887_v55 = vld [vmem:[%s6793_s10 + $0xfe] sm:$0xff] }
 0x12c   : > { %6058 = vmatprep.mubr.msk.f32.mxu0 %vm306_vm3, %v2433_v56 }
 0x12f   : > { %6059 = vmatmul.mubr.msk.f32.gmra.mrb[28].mxu0 %vm306_vm3, %v2434_v57  ;;  %v2888_v57 = vld [vmem:[%s6793_s10 + $0x106] sm:$0xff] }
 0x130   : > { %6061 = vmatprep.mubr.msk.f32.mxu0 %vm306_vm3, %v2435_v58 }
 0x133   : > { %6062 = vmatmul.mubr.msk.f32.gmra.mrb[30].mxu0 %vm306_vm3, %v2436_v59  ;;  %v2889_v59 = vld [vmem:[%s6793_s10 + $0x10e] sm:$0xff] }
 0x134   : > { %6064 = vmatprep.mubr.msk.f32.mxu0 %vm306_vm3, %v2437_v60 }
 0x137   : > { %6065 = vmatmul.mubr.msk.f32.gmra.mrb[32].mxu0 %vm306_vm3, %v2438_v61  ;;  %v2890_v61 = vld [vmem:[%s6793_s10 + $0x116] sm:$0xff] }
 0x138   : > { %6067 = vmatprep.mubr.msk.f32.mxu0 %vm306_vm3, %v2439_v62 }
 0x13b   : > { %6068 = vmatmul.mubr.msk.f32.gmra.mrb[34].mxu0 %vm306_vm3, %v2440_v63  ;;  %v2891_v63 = vld [vmem:[%s6793_s10 + $0x11e] sm:$0xff] }
 0x13c   : > { %6070 = vmatprep.mubr.msk.f32.mxu0 %vm306_vm3, %v2441_v0 }
 0x13f   : > { %6071 = vmatmul.mubr.msk.f32.gmra.mrb[36].mxu0 %vm306_vm3, %v2442_v1  ;;  %v2892_v1 = vld [vmem:[%s6793_s10 + $0x126] sm:$0xff] }
 0x140   : > { %6077 = vmatprep.mubr.msk.f32.mxu0 %vm306_vm3, %v2856_v3 }
 0x143   : > { %6078 = vmatmul.mubr.msk.f32.vlgmr.msra.gmra.mrb[0].mxu0 %vm306_vm3, %v2857_v4  ;;  %v2893_v4 = vld [vmem:[%s6793_s10 + $0x12e] sm:$0xf]  ;;  %s7745_s10 = scalar_lea.vmem %s7867_s5, %s6700_s7 }
 0x144   : > { %6080 = vmatprep.mubr.msk.f32.mxu0 %vm306_vm3, %v2858_v5 }
 0x147   : > { %6081 = vmatmul.mubr.msk.f32.gmra.mrb[2].mxu0 %vm306_vm3, %v2859_v6 }
 0x148   : > { %6083 = vmatprep.mubr.msk.f32.mxu0 %vm306_vm3, %v2860_v7 }
 0x149   : > { %v7340_v14 = vpop.f32.mrb[0].mxu1 }
 0x14a   : > { %v7343_v16 = vpop.f32.mrb[1].mxu1 }
 0x14b   : > { %6084 = vmatmul.mubr.msk.f32.gmra.mrb[4].mxu0 %vm306_vm3, %v2861_v8 }
 0x14c   : > { %6086 = vmatprep.mubr.msk.f32.mxu0 %vm306_vm3, %v2862_v9 }
 0x14d   : > { %v7348_v18 = vpop.f32.mrb[2].mxu1 }
 0x14e   : > { %v7351_v21 = vpop.f32.mrb[3].mxu1 }
 0x14f   : > { %6087 = vmatmul.mubr.msk.f32.gmra.mrb[6].mxu0 %vm306_vm3, %v2863_v10 }
 0x150   : > { %6089 = vmatprep.mubr.msk.f32.mxu0 %vm306_vm3, %v2864_v11 }
 0x151   : > { %v7356_v23 = vpop.f32.mrb[4].mxu1 }
 0x152   : > { %v7359_v12 = vpop.f32.mrb[5].mxu1 }
 0x153   : > { %6090 = vmatmul.mubr.msk.f32.gmra.mrb[8].mxu0 %vm306_vm3, %v2865_v13 }
 0x154   : > { %6092 = vmatprep.mubr.msk.f32.mxu0 %vm306_vm3, %v2866_v15 }
 0x155   : > { %v7364_v26 = vpop.f32.mrb[6].mxu1 }
 0x156   : > { %v7367_v28 = vpop.f32.mrb[7].mxu1 }
 0x157   : > { %6093 = vmatmul.mubr.msk.f32.gmra.mrb[10].mxu0 %vm306_vm3, %v2867_v17 }
 0x158   : > { %6095 = vmatprep.mubr.msk.f32.mxu0 %vm306_vm3, %v2868_v20  ;;  %v6720_v20 = vmov 0.0  }
 0x159   : > { %v7372_v30 = vpop.f32.mrb[8].mxu1  ;;  %3391 = vst.msk [vmem:[#allocation2] sm:$0xff] %vm3390_vm4, %v6720_v20  ;;  %3392 = vst.msk [vmem:[#allocation2 + $0x134] sm:$0xff] %vm3390_vm4, %v6720_v20 }
 0x15a   : > { %v7375_v31 = vpop.f32.mrb[9].mxu1 }
 0x15b   : > { %6096 = vmatmul.mubr.msk.f32.gmra.mrb[12].mxu0 %vm306_vm3, %v2869_v22  ;;  %v3470_v22 = vld [vmem:[%s7865_s3] sm:$0xff] }
 0x15c   : > { %6098 = vmatprep.mubr.msk.f32.mxu0 %vm306_vm3, %v2870_v24  ;;  %v3471_v24 = vld [vmem:[%s7865_s3 + $0x8] sm:$0xff] }
 0x15d   : > { %v7380_v33 = vpop.f32.mrb[10].mxu1 }
 0x15e   : > { %v7383_v35 = vpop.f32.mrb[11].mxu1 }
 0x15f   : > { %6099 = vmatmul.mubr.msk.f32.gmra.mrb[14].mxu0 %vm306_vm3, %v2871_v25  ;;  %v6379_v25 = vpack.c.bf16 %v3471_v24, %v3470_v22 }
 0x160   : > { %6101 = vmatprep.mubr.msk.f32.mxu0 %vm306_vm3, %v2872_v27 }
 0x161   : > { %v7388_v37 = vpop.f32.mrb[12].mxu1  ;;  %6380 = vmatprep.subr.bf16.mxu1 %v6379_v25 }
 0x162   : > { %v7391_v39 = vpop.f32.mrb[13].mxu1 }
 0x163   : > { %6102 = vmatmul.mubr.msk.f32.gmra.mrb[16].mxu0 %vm306_vm3, %v2873_v29  ;;  %v7484_v29 = vld [vmem:[%s7864_s2] ss:$0 sm:$0xff] }
 0x164   : > { %6104 = vmatprep.mubr.msk.f32.mxu0 %vm306_vm3, %v2874_v2 }
 0x165   : > { %v7396_v41 = vpop.f32.mrb[14].mxu1 }
 0x166   : > { %v7399_v43 = vpop.f32.mrb[15].mxu1 }
 0x167   : > { %6105 = vmatmul.mubr.msk.f32.gmra.mrb[18].mxu0 %vm306_vm3, %v2875_v32 }
 0x168   : > { %6107 = vmatprep.mubr.msk.f32.mxu0 %vm306_vm3, %v2876_v34 }
 0x169   : > { %v7404_v44 = vpop.f32.mrb[16].mxu1 }
 0x16a   : > { %v7407_v46 = vpop.f32.mrb[17].mxu1 }
 0x16b   : > { %6108 = vmatmul.mubr.msk.f32.gmra.mrb[20].mxu0 %vm306_vm3, %v2877_v36 }
 0x16c   : > { %6110 = vmatprep.mubr.msk.f32.mxu0 %vm306_vm3, %v2878_v38 }
 0x16d   : > { %v7412_v48 = vpop.f32.mrb[18].mxu1 }
 0x16e   : > { %v7415_v50 = vpop.f32.mrb[19].mxu1 }
 0x16f   : > { %6111 = vmatmul.mubr.msk.f32.gmra.mrb[22].mxu0 %vm306_vm3, %v2879_v40 }
 0x170   : > { %6113 = vmatprep.mubr.msk.f32.mxu0 %vm306_vm3, %v2880_v42 }
 0x171   : > { %v7420_v52 = vpop.f32.mrb[20].mxu1 }
 0x172   : > { %v7423_v54 = vpop.f32.mrb[21].mxu1 }
 0x173   : > { %6114 = vmatmul.mubr.msk.f32.gmra.mrb[24].mxu0 %vm306_vm3, %v2881_v19 }
 0x174   : > { %6116 = vmatprep.mubr.msk.f32.mxu0 %vm306_vm3, %v2882_v45 }
 0x175   : > { %v7428_v56 = vpop.f32.mrb[22].mxu1 }
 0x176   : > { %v7431_v58 = vpop.f32.mrb[23].mxu1 }
 0x177   : > { %6117 = vmatmul.mubr.msk.f32.gmra.mrb[26].mxu0 %vm306_vm3, %v2883_v47 }
 0x178   : > { %6119 = vmatprep.mubr.msk.f32.mxu0 %vm306_vm3, %v2884_v49 }
 0x179   : > { %v7436_v60 = vpop.f32.mrb[24].mxu1 }
 0x17a   : > { %v7439_v62 = vpop.f32.mrb[25].mxu1 }
 0x17b   : > { %6120 = vmatmul.mubr.msk.f32.gmra.mrb[28].mxu0 %vm306_vm3, %v2885_v51 }
 0x17c   : > { %6122 = vmatprep.mubr.msk.f32.mxu0 %vm306_vm3, %v2886_v53 }
 0x17d   : > { %v7444_v0 = vpop.f32.mrb[26].mxu1 }
 0x17e   : > { %v7447_v3 = vpop.f32.mrb[27].mxu1 }
 0x17f   : > { %6123 = vmatmul.mubr.msk.f32.gmra.mrb[30].mxu0 %vm306_vm3, %v2887_v55 }
 0x180   : > { %6125 = vmatprep.mubr.msk.f32.mxu0 %vm306_vm3, %v2888_v57 }
 0x181   : > { %v7452_v5 = vpop.f32.mrb[28].mxu1 }
 0x182   : > { %v7454_v6 = vpop.f32.mrb[29].mxu1 }
 0x183   : > { %6126 = vmatmul.mubr.msk.f32.gmra.mrb[32].mxu0 %vm306_vm3, %v2889_v59 }
 0x184   : > { %6128 = vmatprep.mubr.msk.f32.mxu0 %vm306_vm3, %v2890_v61 }
 0x185   : > { %v7457_v7 = vpop.f32.mrb[30].mxu1 }
 0x186   : > { %v7459_v8 = vpop.f32.mrb[31].mxu1 }
 0x187   : > { %6129 = vmatmul.mubr.msk.f32.gmra.mrb[34].mxu0 %vm306_vm3, %v2891_v63 }
 0x188   : > { %6131 = vmatprep.mubr.msk.f32.mxu0 %vm306_vm3, %v2892_v1  ;;  %v3472_v1 = vld [vmem:[%s7865_s3 + $0x10] sm:$0xff] }
 0x189   : > { %v7461_v9 = vpop.f32.mrb[32].mxu1 }
 0x18a   : > { %v7463_v10 = vpop.f32.mrb[33].mxu1 }
 0x18b   : > { %6132 = vmatmul.mubr.msk.f32.gmra.mrb[36].mxu0 %vm306_vm3, %v2893_v4 }
 0x18d   : > { %v7465_v11 = vpop.f32.mrb[34].mxu1 }
 0x18e   : > { %v7467_v13 = vpop.f32.mrb[35].mxu1 }
 0x191   : > { %v7469_v15 = vpop.f32.mrb[36].mxu1 }
 0x192   : > { %v7471_v17 = vpop.f32.mrb[37].mxu1 }
 0x216   : > { %v6079_v27 = vpop.f32.mrb[0].mxu0 }
 0x217   : > { %v6395_v2 = vadd.f32 %v6079_v27, %v7340_v14  ;;  %v3080_v32 = vpop.f32.mrb[1].mxu0 }
 0x218   : > { %v6396_v34 = vadd.f32 %v3080_v32, %v7343_v16 }
 0x219   : > { %v3315_v36 = vadd.f32 %v6395_v2, %v7484_v29 }
 0x21a   : > { %v3314_v38 = vadd.f32 %v6396_v34, %v7484_v29  ;;  %v6082_v40 = vpop.f32.mrb[2].mxu0 }
 0x21b   : > { %v3353_v42 = vmax.f32 %v3315_v36, 0.0  ;;  %v6397_v19 = vadd.f32 %v6082_v40, %v7348_v18  ;;  %v3090_v45 = vpop.f32.mrb[3].mxu0 }
 0x21c   : > { %v3352_v47 = vmax.f32 %v3314_v38, 0.0  ;;  %v6398_v49 = vadd.f32 %v3090_v45, %v7351_v21 }
 0x21d   : > { %3394 = vst.msk [vmem:[#allocation2 + $0x10] sm:$0xff] %vm3390_vm4, %v3353_v42  ;;  %v3317_v51 = vadd.f32 %v6397_v19, %v7484_v29 }
 0x21e   : > { %3393 = vst.msk [vmem:[#allocation2 + $0x8] sm:$0xff] %vm3390_vm4, %v3352_v47  ;;  %v3316_v14 = vadd.f32 %v6398_v49, %v7484_v29  ;;  %v6085_v16 = vpop.f32.mrb[4].mxu0 }
 0x21f   : > { %v3355_v53 = vmax.f32 %v3317_v51, 0.0  ;;  %v6399_v55 = vadd.f32 %v6085_v16, %v7356_v23  ;;  %v3100_v57 = vpop.f32.mrb[5].mxu0  ;;  %v3473_v23 = vld [vmem:[%s7865_s3 + $0x18] sm:$0xff] }
 0x220   : > { %v3354_v59 = vmax.f32 %v3316_v14, 0.0  ;;  %v6400_v18 = vadd.f32 %v3100_v57, %v7359_v12  ;;  %v6383_v32 = vpack.c.bf16 %v3473_v23, %v3472_v1 }
 0x221   : > { %3396 = vst.msk [vmem:[#allocation2 + $0x20] sm:$0xff] %vm3390_vm4, %v3355_v53  ;;  %v3319_v21 = vadd.f32 %v6399_v55, %v7484_v29 }
 0x222   : > { %3395 = vst.msk [vmem:[#allocation2 + $0x18] sm:$0xff] %vm3390_vm4, %v3354_v59  ;;  %v3318_v61 = vadd.f32 %v6400_v18, %v7484_v29  ;;  %v6088_v63 = vpop.f32.mrb[6].mxu0 }
 0x223   : > { %v3357_v4 = vmax.f32 %v3319_v21, 0.0  ;;  %v6401_v12 = vadd.f32 %v6088_v63, %v7364_v26  ;;  %v3110_v20 = vpop.f32.mrb[7].mxu0  ;;  %v5256_v26 = vld [vmem:[%s7865_s3 + $0x40] sm:$0xff] }
 0x224   : > { %v3356_v22 = vmax.f32 %v3318_v61, 0.0  ;;  %v6402_v24 = vadd.f32 %v3110_v20, %v7367_v28  ;;  %v3475_v38 = vld [vmem:[#allocation2 + $0x10] sm:$0xff]  ;;  %v5257_v28 = vld [vmem:[%s7865_s3 + $0x48] sm:$0xff] }
 0x225   : > { %3398 = vst.msk [vmem:[#allocation2 + $0x30] sm:$0xff] %vm3390_vm4, %v3357_v4  ;;  %v3321_v27 = vadd.f32 %v6401_v12, %v7484_v29  ;;  %v3474_v2 = vld [vmem:[#allocation2 + $0x8] sm:$0xff]  ;;  %v7526_v14 = vpack.c.bf16 %v5257_v28, %v5256_v26 }
 0x226   : > { %3397 = vst.msk [vmem:[#allocation2 + $0x28] sm:$0xff] %vm3390_vm4, %v3356_v22  ;;  %v3320_v34 = vadd.f32 %v6402_v24, %v7484_v29  ;;  %v6091_v36 = vpop.f32.mrb[8].mxu0  ;;  %6142 = vmatprep.mubr.msk.f32.mxu1 %vm3390_vm4, %v3474_v2 }
 0x227   : > { %v3359_v40 = vmax.f32 %v3321_v27, 0.0  ;;  %v6403_v42 = vadd.f32 %v6091_v36, %v7372_v30  ;;  %v3120_v19 = vpop.f32.mrb[9].mxu0  ;;  %6143 = vmatmul.mubr.msk.f32.vlgmr.msra.gmra.mrb[38].mxu1 %vm3390_vm4, %v3475_v38 }
 0x228   : > { %v3358_v45 = vmax.f32 %v3320_v34, 0.0  ;;  %v6404_v47 = vadd.f32 %v3120_v19, %v7375_v31  ;;  %6382 = vmatpush3.bf16.msra.mxu1 %v6379_v25  ;;  %v3477_v53 = vld [vmem:[#allocation2 + $0x20] sm:$0xff] }
 0x229   : > { %3400 = vst.msk [vmem:[#allocation2 + $0x40] sm:$0xff] %vm3390_vm4, %v3359_v40  ;;  %v3323_v49 = vadd.f32 %v6403_v42, %v7484_v29  ;;  %v3476_v51 = vld [vmem:[#allocation2 + $0x18] sm:$0xff]  ;;  %6384 = vmatprep.subr.bf16.mxu1 %v6383_v32 }
 0x22a   : > { %3399 = vst.msk [vmem:[#allocation2 + $0x38] sm:$0xff] %vm3390_vm4, %v3358_v45  ;;  %v3322_v16 = vadd.f32 %v6404_v47, %v7484_v29  ;;  %v6094_v30 = vpop.f32.mrb[10].mxu0  ;;  %6145 = vmatprep.mubr.msk.f32.mxu1 %vm3390_vm4, %v3476_v51 }
 0x22b   : > { %v3361_v55 = vmax.f32 %v3323_v49, 0.0  ;;  %v6405_v31 = vadd.f32 %v6094_v30, %v7380_v33  ;;  %v3130_v25 = vpop.f32.mrb[11].mxu0  ;;  %6146 = vmatmul.mubr.msk.f32.gmra.mrb[40].mxu1 %vm3390_vm4, %v3477_v53 }
 0x22c   : > { %v3360_v57 = vmax.f32 %v3322_v16, 0.0  ;;  %v6406_v59 = vadd.f32 %v3130_v25, %v7383_v35  ;;  %6386 = vmatpush3.bf16.msra.mxu1 %v6383_v32  ;;  %v3479_v33 = vld [vmem:[#allocation2 + $0x30] sm:$0xff] }
 0x22d   : > { %3402 = vst.msk [vmem:[#allocation2 + $0x50] sm:$0xff] %vm3390_vm4, %v3361_v55  ;;  %v3325_v18 = vadd.f32 %v6405_v31, %v7484_v29  ;;  %v3478_v21 = vld [vmem:[#allocation2 + $0x28] sm:$0xff]  ;;  %6388 = vmatprep.subr.bf16.mxu1 %v7526_v14 }
 0x22e   : > { %3401 = vst.msk [vmem:[#allocation2 + $0x48] sm:$0xff] %vm3390_vm4, %v3360_v57  ;;  %v3324_v61 = vadd.f32 %v6406_v59, %v7484_v29  ;;  %v6097_v63 = vpop.f32.mrb[12].mxu0  ;;  %6148 = vmatprep.mubr.msk.f32.mxu1 %vm3390_vm4, %v3478_v21 }
 0x22f   : > { %v3363_v1 = vmax.f32 %v3325_v18, 0.0  ;;  %v6407_v23 = vadd.f32 %v6097_v63, %v7388_v37  ;;  %v3140_v35 = vpop.f32.mrb[13].mxu0  ;;  %6149 = vmatmul.mubr.msk.f32.gmra.mrb[42].mxu1 %vm3390_vm4, %v3479_v33 }
 0x230   : > { %v3362_v4 = vmax.f32 %v3324_v61, 0.0  ;;  %v6408_v12 = vadd.f32 %v3140_v35, %v7391_v39  ;;  %v3481_v2 = vld [vmem:[#allocation2 + $0x40] sm:$0xff] }
 0x231   : > { %3404 = vst.msk [vmem:[#allocation2 + $0x60] sm:$0xff] %vm3390_vm4, %v3363_v1  ;;  %v3327_v20 = vadd.f32 %v6407_v23, %v7484_v29  ;;  %v3480_v22 = vld [vmem:[#allocation2 + $0x38] sm:$0xff] }
 0x232   : > { %3403 = vst.msk [vmem:[#allocation2 + $0x58] sm:$0xff] %vm3390_vm4, %v3362_v4  ;;  %v3326_v24 = vadd.f32 %v6408_v12, %v7484_v29  ;;  %v6100_v27 = vpop.f32.mrb[14].mxu0  ;;  %6151 = vmatprep.mubr.msk.f32.mxu1 %vm3390_vm4, %v3480_v22 }
 0x233   : > { %v3365_v37 = vmax.f32 %v3327_v20, 0.0  ;;  %v6409_v32 = vadd.f32 %v6100_v27, %v7396_v41  ;;  %v3150_v34 = vpop.f32.mrb[15].mxu0  ;;  %6152 = vmatmul.mubr.msk.f32.gmra.mrb[44].mxu1 %vm3390_vm4, %v3481_v2 }
 0x234   : > { %v3364_v39 = vmax.f32 %v3326_v24, 0.0  ;;  %v6410_v36 = vadd.f32 %v3150_v34, %v7399_v43  ;;  %v3483_v42 = vld [vmem:[#allocation2 + $0x50] sm:$0xff] }
 0x235   : > { %3406 = vst.msk [vmem:[#allocation2 + $0x70] sm:$0xff] %vm3390_vm4, %v3365_v37  ;;  %v3329_v38 = vadd.f32 %v6409_v32, %v7484_v29  ;;  %v3482_v26 = vld [vmem:[#allocation2 + $0x48] sm:$0xff] }
 0x236   : > { %3405 = vst.msk [vmem:[#allocation2 + $0x68] sm:$0xff] %vm3390_vm4, %v3364_v39  ;;  %v3328_v28 = vadd.f32 %v6410_v36, %v7484_v29  ;;  %v6103_v40 = vpop.f32.mrb[16].mxu0  ;;  %6154 = vmatprep.mubr.msk.f32.mxu1 %vm3390_vm4, %v3482_v26 }
 0x237   : > { %v3367_v41 = vmax.f32 %v3329_v38, 0.0  ;;  %v6411_v19 = vadd.f32 %v6103_v40, %v7404_v44  ;;  %v3160_v45 = vpop.f32.mrb[17].mxu0  ;;  %6155 = vmatmul.mubr.msk.f32.gmra.mrb[46].mxu1 %vm3390_vm4, %v3483_v42 }
 0x238   : > { %v3366_v43 = vmax.f32 %v3328_v28, 0.0  ;;  %v6412_v47 = vadd.f32 %v3160_v45, %v7407_v46  ;;  %v3485_v53 = vld [vmem:[#allocation2 + $0x60] sm:$0xff] }
 0x239   : > { %3408 = vst.msk [vmem:[#allocation2 + $0x80] sm:$0xff] %vm3390_vm4, %v3367_v41  ;;  %v3331_v49 = vadd.f32 %v6411_v19, %v7484_v29  ;;  %v3484_v51 = vld [vmem:[#allocation2 + $0x58] sm:$0xff] }
 0x23a   : > { %3407 = vst.msk [vmem:[#allocation2 + $0x78] sm:$0xff] %vm3390_vm4, %v3366_v43  ;;  %v3330_v16 = vadd.f32 %v6412_v47, %v7484_v29  ;;  %v6106_v30 = vpop.f32.mrb[18].mxu0  ;;  %6157 = vmatprep.mubr.msk.f32.mxu1 %vm3390_vm4, %v3484_v51 }
 0x23b   : > { %v3369_v44 = vmax.f32 %v3331_v49, 0.0  ;;  %v6413_v55 = vadd.f32 %v6106_v30, %v7412_v48  ;;  %v3170_v31 = vpop.f32.mrb[19].mxu0  ;;  %6158 = vmatmul.mubr.msk.f32.gmra.mrb[48].mxu1 %vm3390_vm4, %v3485_v53 }
 0x23c   : > { %v3368_v46 = vmax.f32 %v3330_v16, 0.0  ;;  %v6414_v25 = vadd.f32 %v3170_v31, %v7415_v50  ;;  %v3487_v61 = vld [vmem:[#allocation2 + $0x70] sm:$0xff] }
 0x23d   : > { %3410 = vst.msk [vmem:[#allocation2 + $0x90] sm:$0xff] %vm3390_vm4, %v3369_v44  ;;  %v3333_v57 = vadd.f32 %v6413_v55, %v7484_v29  ;;  %v3486_v59 = vld [vmem:[#allocation2 + $0x68] sm:$0xff] }
 0x23e   : > { %3409 = vst.msk [vmem:[#allocation2 + $0x88] sm:$0xff] %vm3390_vm4, %v3368_v46  ;;  %v3332_v18 = vadd.f32 %v6414_v25, %v7484_v29  ;;  %v6109_v21 = vpop.f32.mrb[20].mxu0  ;;  %6160 = vmatprep.mubr.msk.f32.mxu1 %vm3390_vm4, %v3486_v59 }
 0x23f   : > { %v3371_v48 = vmax.f32 %v3333_v57, 0.0  ;;  %v6415_v63 = vadd.f32 %v6109_v21, %v7420_v52  ;;  %v3180_v33 = vpop.f32.mrb[21].mxu0  ;;  %6161 = vmatmul.mubr.msk.f32.gmra.mrb[50].mxu1 %vm3390_vm4, %v3487_v61 }
 0x240   : > { %v3370_v50 = vmax.f32 %v3332_v18, 0.0  ;;  %v6416_v1 = vadd.f32 %v3180_v33, %v7423_v54  ;;  %v3489_v20 = vld [vmem:[#allocation2 + $0x80] sm:$0xff] }
 0x241   : > { %3412 = vst.msk [vmem:[#allocation2 + $0xa0] sm:$0xff] %vm3390_vm4, %v3371_v48  ;;  %v3335_v23 = vadd.f32 %v6415_v63, %v7484_v29  ;;  %v3488_v35 = vld [vmem:[#allocation2 + $0x78] sm:$0xff] }
 0x242   : > { %3411 = vst.msk [vmem:[#allocation2 + $0x98] sm:$0xff] %vm3390_vm4, %v3370_v50  ;;  %v3334_v4 = vadd.f32 %v6416_v1, %v7484_v29  ;;  %v6112_v12 = vpop.f32.mrb[22].mxu0  ;;  %6163 = vmatprep.mubr.msk.f32.mxu1 %vm3390_vm4, %v3488_v35 }
 0x243   : > { %v3373_v52 = vmax.f32 %v3335_v23, 0.0  ;;  %v6417_v22 = vadd.f32 %v6112_v12, %v7428_v56  ;;  %v3190_v24 = vpop.f32.mrb[23].mxu0  ;;  %6164 = vmatmul.mubr.msk.f32.gmra.mrb[52].mxu1 %vm3390_vm4, %v3489_v20 }
 0x244   : > { %v3372_v54 = vmax.f32 %v3334_v4, 0.0  ;;  %v6418_v27 = vadd.f32 %v3190_v24, %v7431_v58  ;;  %v3491_v39 = vld [vmem:[#allocation2 + $0x90] sm:$0xff] }
 0x245   : > { %3414 = vst.msk [vmem:[#allocation2 + $0xb0] sm:$0xff] %vm3390_vm4, %v3373_v52  ;;  %v3337_v2 = vadd.f32 %v6417_v22, %v7484_v29  ;;  %v3490_v37 = vld [vmem:[#allocation2 + $0x88] sm:$0xff] }
 0x246   : > { %3413 = vst.msk [vmem:[#allocation2 + $0xa8] sm:$0xff] %vm3390_vm4, %v3372_v54  ;;  %v3336_v32 = vadd.f32 %v6418_v27, %v7484_v29  ;;  %v6115_v34 = vpop.f32.mrb[24].mxu0  ;;  %6166 = vmatprep.mubr.msk.f32.mxu1 %vm3390_vm4, %v3490_v37 }
 0x247   : > { %v3375_v56 = vmax.f32 %v3337_v2, 0.0  ;;  %v6419_v36 = vadd.f32 %v6115_v34, %v7436_v60  ;;  %v3200_v38 = vpop.f32.mrb[25].mxu0  ;;  %6167 = vmatmul.mubr.msk.f32.gmra.mrb[54].mxu1 %vm3390_vm4, %v3491_v39 }
 0x248   : > { %v3374_v58 = vmax.f32 %v3336_v32, 0.0  ;;  %v6420_v26 = vadd.f32 %v3200_v38, %v7439_v62  ;;  %v3493_v19 = vld [vmem:[#allocation2 + $0xa0] sm:$0xff] }
 0x249   : > { %3416 = vst.msk [vmem:[#allocation2 + $0xc0] sm:$0xff] %vm3390_vm4, %v3375_v56  ;;  %v3339_v28 = vadd.f32 %v6419_v36, %v7484_v29  ;;  %v3492_v40 = vld [vmem:[#allocation2 + $0x98] sm:$0xff] }
 0x24a   : > { %3415 = vst.msk [vmem:[#allocation2 + $0xb8] sm:$0xff] %vm3390_vm4, %v3374_v58  ;;  %v3338_v42 = vadd.f32 %v6420_v26, %v7484_v29  ;;  %v6118_v41 = vpop.f32.mrb[26].mxu0  ;;  %6169 = vmatprep.mubr.msk.f32.mxu1 %vm3390_vm4, %v3492_v40 }
 0x24b   : > { %v3377_v60 = vmax.f32 %v3339_v28, 0.0  ;;  %v6421_v45 = vadd.f32 %v6118_v41, %v7444_v0  ;;  %v3210_v43 = vpop.f32.mrb[27].mxu0  ;;  %6170 = vmatmul.mubr.msk.f32.gmra.mrb[56].mxu1 %vm3390_vm4, %v3493_v19 }
 0x24c   : > { %v3376_v62 = vmax.f32 %v3338_v42, 0.0  ;;  %v6422_v47 = vadd.f32 %v3210_v43, %v7447_v3  ;;  %v3495_v53 = vld [vmem:[#allocation2 + $0xb0] sm:$0xff] }
 0x24d   : > { %3418 = vst.msk [vmem:[#allocation2 + $0xd0] sm:$0xff] %vm3390_vm4, %v3377_v60  ;;  %v3341_v49 = vadd.f32 %v6421_v45, %v7484_v29  ;;  %v3494_v51 = vld [vmem:[#allocation2 + $0xa8] sm:$0xff] }
 0x24e   : > { %3417 = vst.msk [vmem:[#allocation2 + $0xc8] sm:$0xff] %vm3390_vm4, %v3376_v62  ;;  %v3340_v16 = vadd.f32 %v6422_v47, %v7484_v29  ;;  %v6121_v30 = vpop.f32.mrb[28].mxu0  ;;  %6172 = vmatprep.mubr.msk.f32.mxu1 %vm3390_vm4, %v3494_v51  ;;  %v5258_v47 = vld [vmem:[%s7865_s3 + $0x50] sm:$0xff]  ;;  %v3432_v51 = vld [vmem:[#allocation2 + $0x7] sm:$0xff] }
 0x24f   : > { %v3379_v0 = vmax.f32 %v3341_v49, 0.0  ;;  %v6423_v44 = vadd.f32 %v6121_v30, %v7452_v5  ;;  %v3220_v55 = vpop.f32.mrb[29].mxu0  ;;  %6173 = vmatmul.mubr.msk.f32.gmra.mrb[58].mxu1 %vm3390_vm4, %v3495_v53  ;;  %v5259_v49 = vld [vmem:[%s7865_s3 + $0x58] sm:$0xff]  ;;  %v3433_v30 = vld [vmem:[#allocation2 + $0xf] sm:$0xff] }
 0x250   : > { %v3378_v3 = vmax.f32 %v3340_v16, 0.0  ;;  %v6424_v31 = vadd.f32 %v3220_v55, %v7454_v6  ;;  %v3497_v18 = vld [vmem:[#allocation2 + $0xc0] sm:$0xff]  ;;  %v6391_v16 = vpack.c.bf16 %v5259_v49, %v5258_v47  ;;  %v3434_v53 = vld [vmem:[#allocation2 + $0x17] sm:$0xff]  ;;  %v3437_v55 = vld [vmem:[#allocation2 + $0x2f] sm:$0xff] }
 0x251   : > { %3420 = vst.msk [vmem:[#allocation2 + $0xe0] sm:$0xff] %vm3390_vm4, %v3379_v0  ;;  %v3343_v46 = vadd.f32 %v6423_v44, %v7484_v29  ;;  %v3496_v25 = vld [vmem:[#allocation2 + $0xb8] sm:$0xff]  ;;  %v3436_v44 = vld [vmem:[#allocation2 + $0x27] sm:$0xff] }
 0x252   : > { %3419 = vst.msk [vmem:[#allocation2 + $0xd8] sm:$0xff] %vm3390_vm4, %v3378_v3  ;;  %v3342_v57 = vadd.f32 %v6424_v31, %v7484_v29  ;;  %v6124_v59 = vpop.f32.mrb[30].mxu0  ;;  %6175 = vmatprep.mubr.msk.f32.mxu1 %vm3390_vm4, %v3496_v25  ;;  %v3435_v0 = vld [vmem:[#allocation2 + $0x1f] sm:$0xff]  ;;  %v3438_v3 = vld [vmem:[#allocation2 + $0x37] sm:$0xff] }
 0x253   : > { %v3381_v5 = vmax.f32 %v3343_v46, 0.0  ;;  %v6425_v21 = vadd.f32 %v6124_v59, %v7457_v7  ;;  %v3230_v61 = vpop.f32.mrb[31].mxu0  ;;  %6176 = vmatmul.mubr.msk.f32.gmra.mrb[60].mxu1 %vm3390_vm4, %v3497_v18  ;;  %v3439_v31 = vld [vmem:[#allocation2 + $0x3f] sm:$0xff]  ;;  %v3441_v46 = vld [vmem:[#allocation2 + $0x4f] sm:$0xff]  ;;  %v3442_v25 = vld [vmem:[#allocation2 + $0x57] sm:$0xff] }
 0x254   : > { %v3380_v6 = vmax.f32 %v3342_v57, 0.0  ;;  %v6426_v48 = vadd.f32 %v3230_v61, %v7459_v8  ;;  %v3499_v23 = vld [vmem:[#allocation2 + $0xd0] sm:$0xff]  ;;  %v3443_v57 = vld [vmem:[#allocation2 + $0x5f] sm:$0xff]  ;;  %v3444_v59 = vld [vmem:[#allocation2 + $0x67] sm:$0xff] }
 0x255   : > { %3422 = vst.msk [vmem:[#allocation2 + $0xf0] sm:$0xff] %vm3390_vm4, %v3381_v5  ;;  %v3345_v63 = vadd.f32 %v6425_v21, %v7484_v29  ;;  %v3498_v33 = vld [vmem:[#allocation2 + $0xc8] sm:$0xff]  ;;  %v3446_v5 = vld [vmem:[#allocation2 + $0x77] sm:$0xff]  ;;  %v3447_v21 = vld [vmem:[#allocation2 + $0x7f] sm:$0xff] }
 0x256   : > { %3421 = vst.msk [vmem:[#allocation2 + $0xe8] sm:$0xff] %vm3390_vm4, %v3380_v6  ;;  %v3344_v50 = vadd.f32 %v6426_v48, %v7484_v29  ;;  %v6127_v1 = vpop.f32.mrb[32].mxu0  ;;  %6178 = vmatprep.mubr.msk.f32.mxu1 %vm3390_vm4, %v3498_v33  ;;  %v3445_v18 = vld [vmem:[#allocation2 + $0x6f] sm:$0xff]  ;;  %v3448_v61 = vld [vmem:[#allocation2 + $0x87] sm:$0xff]  ;;  %v3450_v48 = vld [vmem:[#allocation2 + $0x97] sm:$0xff] }
 0x257   : > { %v3383_v7 = vmax.f32 %v3345_v63, 0.0  ;;  %v6427_v35 = vadd.f32 %v6127_v1, %v7461_v9  ;;  %v3240_v4 = vpop.f32.mrb[33].mxu0  ;;  %6179 = vmatmul.mubr.msk.f32.gmra.mrb[62].mxu1 %vm3390_vm4, %v3499_v23  ;;  %v3449_v6 = vld [vmem:[#allocation2 + $0x8f] sm:$0xff]  ;;  %v3451_v63 = vld [vmem:[#allocation2 + $0x9f] sm:$0xff]  ;;  %v3452_v33 = vld [vmem:[#allocation2 + $0xa7] sm:$0xff] }
 0x258   : > { %v3382_v8 = vmax.f32 %v3344_v50, 0.0  ;;  %v6428_v12 = vadd.f32 %v3240_v4, %v7463_v10  ;;  %v3501_v54 = vld [vmem:[#allocation2 + $0xe0] sm:$0xff]  ;;  %v3453_v50 = vld [vmem:[#allocation2 + $0xaf] sm:$0xff]  ;;  %v3454_v1 = vld [vmem:[#allocation2 + $0xb7] sm:$0xff] }
 0x259   : > { %3424 = vst.msk [vmem:[#allocation2 + $0x100] sm:$0xff] %vm3390_vm4, %v3383_v7  ;;  %v3347_v20 = vadd.f32 %v6427_v35, %v7484_v29  ;;  %v3500_v52 = vld [vmem:[#allocation2 + $0xd8] sm:$0xff]  ;;  %v3456_v7 = vld [vmem:[#allocation2 + $0xc7] sm:$0xff]  ;;  %v3457_v35 = vld [vmem:[#allocation2 + $0xcf] sm:$0xff] }
 0x25a   : > { %3423 = vst.msk [vmem:[#allocation2 + $0xf8] sm:$0xff] %vm3390_vm4, %v3382_v8  ;;  %v3346_v22 = vadd.f32 %v6428_v12, %v7484_v29  ;;  %v6130_v24 = vpop.f32.mrb[34].mxu0  ;;  %6181 = vmatprep.mubr.msk.f32.mxu1 %vm3390_vm4, %v3500_v52  ;;  %v3455_v23 = vld [vmem:[#allocation2 + $0xbf] sm:$0xff]  ;;  %v3458_v4 = vld [vmem:[#allocation2 + $0xd7] sm:$0xff]  ;;  %v4279_v49 = vld [vmem:[#allocation2 + $0xc9] sm:$0xff] }
 0x25b   : > { %v3385_v9 = vmax.f32 %v3347_v20, 0.0  ;;  %v6429_v27 = vadd.f32 %v6130_v24, %v7465_v11  ;;  %v3250_v2 = vpop.f32.mrb[35].mxu0  ;;  %6182 = vmatmul.mubr.msk.f32.gmra.mrb[64].mxu1 %vm3390_vm4, %v3501_v54  ;;  %v3459_v8 = vld [vmem:[#allocation2 + $0xdf] sm:$0xff] }
 0x25c   : > { %v3384_v10 = vmax.f32 %v3346_v22, 0.0  ;;  %v6430_v37 = vadd.f32 %v3250_v2, %v7467_v13  ;;  %v3503_v36 = vld [vmem:[#allocation2 + $0xf0] sm:$0xff]  ;;  %v4278_v47 = vld [vmem:[#allocation2 + $0xc1] sm:$0xff] }
 0x25d   : > { %3426 = vst.msk [vmem:[#allocation2 + $0x110] sm:$0xff] %vm3390_vm4, %v3385_v9  ;;  %v3349_v32 = vadd.f32 %v6429_v27, %v7484_v29  ;;  %v3502_v34 = vld [vmem:[#allocation2 + $0xe8] sm:$0xff] }
 0x25e   : > { %3425 = vst.msk [vmem:[#allocation2 + $0x108] sm:$0xff] %vm3390_vm4, %v3384_v10  ;;  %v3348_v39 = vadd.f32 %v6430_v37, %v7484_v29  ;;  %v6133_v56 = vpop.f32.mrb[36].mxu0  ;;  %6184 = vmatprep.mubr.msk.f32.mxu1 %vm3390_vm4, %v3502_v34  ;;  %v3460_v12 = vld [vmem:[#allocation2 + $0xe7] sm:$0xff]  ;;  %v3461_v20 = vld [vmem:[#allocation2 + $0xef] sm:$0xff]  ;;  %v4257_v34 = vld [vmem:[#allocation2 + $0x19] sm:$0xff] }
 0x25f   : > { %v3387_v11 = vmax.f32 %v3349_v32, 0.0  ;;  %v6431_v38 = vadd.f32 %v6133_v56, %v7469_v15  ;;  %v3260_v58 = vpop.f32.mrb[37].mxu0  ;;  %6185 = vmatmul.mubr.msk.f32.gmra.mrb[66].mxu1 %vm3390_vm4, %v3503_v36  ;;  %v4255_v37 = vld [vmem:[#allocation2 + $0x9] sm:$0xff]  ;;  %v4256_v32 = vld [vmem:[#allocation2 + $0x11] sm:$0xff] }
 0x260   : > { %v3386_v13 = vmax.f32 %v3348_v39, 0.0  ;;  %v6432_v26 = vadd.f32 %v3260_v58, %v7471_v17  ;;  %v3505_v41 = vld [vmem:[#allocation2 + $0x100] sm:$0xff]  ;;  %v4259_v56 = vld [vmem:[#allocation2 + $0x29] sm:$0xff]  ;;  %v4260_v36 = vld [vmem:[#allocation2 + $0x31] sm:$0xff] }
 0x261   : > { %3428 = vst.msk [vmem:[#allocation2 + $0x120] sm:$0xff] %vm3390_vm4, %v3387_v11  ;;  %v3351_v28 = vadd.f32 %v6431_v38, %v7484_v29  ;;  %v3504_v40 = vld [vmem:[#allocation2 + $0xf8] sm:$0xff]  ;;  %v4258_v39 = vld [vmem:[#allocation2 + $0x21] sm:$0xff]  ;;  %v4263_v58 = vld [vmem:[#allocation2 + $0x49] sm:$0xff] }
 0x262   : > { %3427 = vst.msk [vmem:[#allocation2 + $0x118] sm:$0xff] %vm3390_vm4, %v3386_v13  ;;  %v3350_v42 = vadd.f32 %v6432_v26, %v7484_v29  ;;  %6187 = vmatprep.mubr.msk.f32.mxu1 %vm3390_vm4, %v3504_v40  ;;  %v3462_v52 = vld [vmem:[#allocation2 + $0xf7] sm:$0xff]  ;;  %v3463_v22 = vld [vmem:[#allocation2 + $0xff] sm:$0xff]  ;;  %v4267_v40 = vld [vmem:[#allocation2 + $0x69] sm:$0xff] }
 0x263   : > { %v3389_v15 = vmax.f32 %v3351_v28, 0.0  ;;  %6188 = vmatmul.mubr.msk.f32.gmra.mrb[68].mxu1 %vm3390_vm4, %v3505_v41  ;;  %v4261_v11 = vld [vmem:[#allocation2 + $0x39] sm:$0xff]  ;;  %v4262_v38 = vld [vmem:[#allocation2 + $0x41] sm:$0xff]  ;;  %v4264_v13 = vld [vmem:[#allocation2 + $0x51] sm:$0xff] }
 0x264   : > { %v3388_v19 = vmax.f32 %v3350_v42, 0.0  ;;  %v3507_v17 = vld [vmem:[#allocation2 + $0x110] sm:$0xff]  ;;  %v4265_v26 = vld [vmem:[#allocation2 + $0x59] sm:$0xff]  ;;  %v4266_v28 = vld [vmem:[#allocation2 + $0x61] sm:$0xff] }
 0x265   : > { %3431 = vst.msk [vmem:[#allocation2 + $0x130] sm:$0xf] %vm3430_vm5, %v3389_v15  ;;  %v3506_v60 = vld [vmem:[#allocation2 + $0x108] sm:$0xff]  ;;  %v4268_v42 = vld [vmem:[#allocation2 + $0x71] sm:$0xff]  ;;  %v4269_v41 = vld [vmem:[#allocation2 + $0x79] sm:$0xff] }
 0x266   : > { %3429 = vst.msk [vmem:[#allocation2 + $0x128] sm:$0xff] %vm3390_vm4, %v3388_v19  ;;  %6190 = vmatprep.mubr.msk.f32.mxu1 %vm3390_vm4, %v3506_v60  ;;  %v3464_v24 = vld [vmem:[#allocation2 + $0x107] sm:$0xff]  ;;  %v3465_v54 = vld [vmem:[#allocation2 + $0x10f] sm:$0xff] }
 0x267   : > { %6191 = vmatmul.mubr.msk.f32.gmra.mrb[70].mxu1 %vm3390_vm4, %v3507_v17  ;;  %v4270_v15 = vld [vmem:[#allocation2 + $0x81] sm:$0xff]  ;;  %v4271_v19 = vld [vmem:[#allocation2 + $0x89] sm:$0xff]  ;;  %v4272_v60 = vld [vmem:[#allocation2 + $0x91] sm:$0xff] }
 0x268   : > { %v3509_v29 = vld [vmem:[#allocation2 + $0x120] sm:$0xff] }
 0x269   : > { %v3508_v45 = vld [vmem:[#allocation2 + $0x118] sm:$0xff] }
 0x26a   : > { %6193 = vmatprep.mubr.msk.f32.mxu1 %vm3390_vm4, %v3508_v45  ;;  %v3466_v9 = vld [vmem:[#allocation2 + $0x117] sm:$0xff]  ;;  %v3467_v27 = vld [vmem:[#allocation2 + $0x11f] sm:$0xff] }
 0x26b   : > { %6194 = vmatmul.mubr.msk.f32.gmra.mrb[72].mxu1 %vm3390_vm4, %v3509_v29  ;;  %v4273_v17 = vld [vmem:[#allocation2 + $0x99] sm:$0xff]  ;;  %v4274_v45 = vld [vmem:[#allocation2 + $0xa1] sm:$0xff]  ;;  %v4275_v29 = vld [vmem:[#allocation2 + $0xa9] sm:$0xff] }
 0x26c   : > { %v3511_v62 = vld [vmem:[#allocation2 + $0x130] sm:$0xf] }
 0x26d   : > { %v3510_v43 = vld [vmem:[#allocation2 + $0x128] sm:$0xff] }
 0x26e   : > { %6196 = vmatprep.mubr.msk.f32.mxu1 %vm3390_vm4, %v3510_v43  ;;  %v3468_v2 = vld [vmem:[#allocation2 + $0x127] sm:$0xff]  ;;  %v3469_v10 = vld [vmem:[#allocation2 + $0x12f] sm:$0xf] }
 0x26f   : > { %6197 = vmatmul.mubr.msk.f32.gmra.mrb[74].mxu1 %vm3390_vm4, %v3511_v62  ;;  %v4276_v43 = vld [vmem:[#allocation2 + $0xb1] sm:$0xff]  ;;  %v4277_v62 = vld [vmem:[#allocation2 + $0xb9] sm:$0xff] }
 0x270   : > { %6207 = vmatprep.mubr.msk.f32.mxu1 %vm3390_vm4, %v3432_v51  ;;  %v4280_v51 = vld [vmem:[#allocation2 + $0xd1] sm:$0xff] }
 0x273   : > { %6208 = vmatmul.mubr.msk.f32.vlgmr.msra.gmra.mrb[38].mxu1 %vm3390_vm4, %v3433_v30  ;;  %v4282_v30 = vld [vmem:[#allocation2 + $0xe1] sm:$0xff] }
 0x274   : > { %6390 = vmatpush3.bf16.msra.mxu1 %v7526_v14  ;;  %6210 = vmatprep.mubr.msk.f32.mxu1 %vm3390_vm4, %v3434_v53  ;;  %v3440_v14 = vld [vmem:[#allocation2 + $0x47] sm:$0xff] }
 0x275   : > { %6392 = vmatprep.subr.bf16.mxu1 %v6391_v16  ;;  %v4283_v53 = vld [vmem:[#allocation2 + $0xe9] sm:$0xff] }
 0x277   : > { %6211 = vmatmul.mubr.msk.f32.gmra.mrb[40].mxu1 %vm3390_vm4, %v3435_v0  ;;  %v4284_v0 = vld [vmem:[#allocation2 + $0xf1] sm:$0xff] }
 0x278   : > { %6213 = vmatprep.mubr.msk.f32.mxu1 %vm3390_vm4, %v3436_v44  ;;  %6394 = vmatpush3.bf16.msra.mxu1 %v6391_v16  ;;  %v4281_v16 = vld [vmem:[#allocation2 + $0xd9] sm:$0xff] }
 0x279   : > { %v4285_v44 = vld [vmem:[#allocation2 + $0xf9] sm:$0xff] }
 0x27b   : > { %6214 = vmatmul.mubr.msk.f32.gmra.mrb[42].mxu1 %vm3390_vm4, %v3437_v55  ;;  %v4286_v55 = vld [vmem:[#allocation2 + $0x101] sm:$0xff] }
 0x27c   : > { %6216 = vmatprep.mubr.msk.f32.mxu1 %vm3390_vm4, %v3438_v3  ;;  %v4287_v3 = vld [vmem:[#allocation2 + $0x109] sm:$0xff] }
 0x27f   : > { %6217 = vmatmul.mubr.msk.f32.gmra.mrb[44].mxu1 %vm3390_vm4, %v3439_v31  ;;  %v4288_v31 = vld [vmem:[#allocation2 + $0x111] sm:$0xff] }
 0x280   : > { %6219 = vmatprep.mubr.msk.f32.mxu1 %vm3390_vm4, %v3440_v14  ;;  %v4289_v14 = vld [vmem:[#allocation2 + $0x119] sm:$0xff] }
 0x283   : > { %6220 = vmatmul.mubr.msk.f32.gmra.mrb[46].mxu1 %vm3390_vm4, %v3441_v46  ;;  %v4290_v46 = vld [vmem:[#allocation2 + $0x121] sm:$0xff] }
 0x284   : > { %6222 = vmatprep.mubr.msk.f32.mxu1 %vm3390_vm4, %v3442_v25  ;;  %v4291_v25 = vld [vmem:[#allocation2 + $0x129] sm:$0xff] }
 0x287   : > { %6223 = vmatmul.mubr.msk.f32.gmra.mrb[48].mxu1 %vm3390_vm4, %v3443_v57  ;;  %v4292_v57 = vld [vmem:[#allocation2 + $0x131] sm:$0xf] }
 0x288   : > { %6225 = vmatprep.mubr.msk.f32.mxu1 %vm3390_vm4, %v3444_v59  ;;  %v7739_v59 = vld [vmem:[%s7866_s4] ss:$0 sm:$0xff] }
 0x28b   : > { %6226 = vmatmul.mubr.msk.f32.gmra.mrb[50].mxu1 %vm3390_vm4, %v3445_v18 }
 0x28c   : > { %6228 = vmatprep.mubr.msk.f32.mxu1 %vm3390_vm4, %v3446_v5 }
 0x28f   : > { %6229 = vmatmul.mubr.msk.f32.gmra.mrb[52].mxu1 %vm3390_vm4, %v3447_v21 }
 0x290   : > { %6231 = vmatprep.mubr.msk.f32.mxu1 %vm3390_vm4, %v3448_v61 }
 0x293   : > { %6232 = vmatmul.mubr.msk.f32.gmra.mrb[54].mxu1 %vm3390_vm4, %v3449_v6 }
 0x294   : > { %6234 = vmatprep.mubr.msk.f32.mxu1 %vm3390_vm4, %v3450_v48 }
 0x297   : > { %6235 = vmatmul.mubr.msk.f32.gmra.mrb[56].mxu1 %vm3390_vm4, %v3451_v63 }
 0x298   : > { %6237 = vmatprep.mubr.msk.f32.mxu1 %vm3390_vm4, %v3452_v33 }
 0x29b   : > { %6238 = vmatmul.mubr.msk.f32.gmra.mrb[58].mxu1 %vm3390_vm4, %v3453_v50 }
 0x29c   : > { %6240 = vmatprep.mubr.msk.f32.mxu1 %vm3390_vm4, %v3454_v1 }
 0x29f   : > { %6241 = vmatmul.mubr.msk.f32.gmra.mrb[60].mxu1 %vm3390_vm4, %v3455_v23 }
 0x2a0   : > { %6243 = vmatprep.mubr.msk.f32.mxu1 %vm3390_vm4, %v3456_v7 }
 0x2a3   : > { %6244 = vmatmul.mubr.msk.f32.gmra.mrb[62].mxu1 %vm3390_vm4, %v3457_v35 }
 0x2a4   : > { %6246 = vmatprep.mubr.msk.f32.mxu1 %vm3390_vm4, %v3458_v4 }
 0x2a7   : > { %6247 = vmatmul.mubr.msk.f32.gmra.mrb[64].mxu1 %vm3390_vm4, %v3459_v8 }
 0x2a8   : > { %6249 = vmatprep.mubr.msk.f32.mxu1 %vm3390_vm4, %v3460_v12 }
 0x2ab   : > { %6250 = vmatmul.mubr.msk.f32.gmra.mrb[66].mxu1 %vm3390_vm4, %v3461_v20 }
 0x2ac   : > { %6252 = vmatprep.mubr.msk.f32.mxu1 %vm3390_vm4, %v3462_v52 }
 0x2af   : > { %6253 = vmatmul.mubr.msk.f32.gmra.mrb[68].mxu1 %vm3390_vm4, %v3463_v22 }
 0x2b0   : > { %6255 = vmatprep.mubr.msk.f32.mxu1 %vm3390_vm4, %v3464_v24 }
 0x2b3   : > { %6256 = vmatmul.mubr.msk.f32.gmra.mrb[70].mxu1 %vm3390_vm4, %v3465_v54 }
 0x2b4   : > { %6258 = vmatprep.mubr.msk.f32.mxu1 %vm3390_vm4, %v3466_v9 }
 0x2b7   : > { %6259 = vmatmul.mubr.msk.f32.gmra.mrb[72].mxu1 %vm3390_vm4, %v3467_v27 }
 0x2b8   : > { %6261 = vmatprep.mubr.msk.f32.mxu1 %vm3390_vm4, %v3468_v2 }
 0x2bb   : > { %6262 = vmatmul.mubr.msk.f32.gmra.mrb[74].mxu1 %vm3390_vm4, %v3469_v10 }
 0x2bc   : > { %6272 = vmatprep.mubr.msk.f32.mxu1 %vm3390_vm4, %v4255_v37 }
 0x2bf   : > { %6273 = vmatmul.mubr.msk.f32.vlgmr.msra.gmra.mrb[38].mxu1 %vm3390_vm4, %v4256_v32 }
 0x2c0   : > { %6275 = vmatprep.mubr.msk.f32.mxu1 %vm3390_vm4, %v4257_v34 }
 0x2c3   : > { %6276 = vmatmul.mubr.msk.f32.gmra.mrb[40].mxu1 %vm3390_vm4, %v4258_v39 }
 0x2c4   : > { %6278 = vmatprep.mubr.msk.f32.mxu1 %vm3390_vm4, %v4259_v56 }
 0x2c7   : > { %6279 = vmatmul.mubr.msk.f32.gmra.mrb[42].mxu1 %vm3390_vm4, %v4260_v36 }
 0x2c8   : > { %6281 = vmatprep.mubr.msk.f32.mxu1 %vm3390_vm4, %v4261_v11 }
 0x2cb   : > { %6282 = vmatmul.mubr.msk.f32.gmra.mrb[44].mxu1 %vm3390_vm4, %v4262_v38 }
 0x2cc   : > { %6284 = vmatprep.mubr.msk.f32.mxu1 %vm3390_vm4, %v4263_v58 }
 0x2cf   : > { %6285 = vmatmul.mubr.msk.f32.gmra.mrb[46].mxu1 %vm3390_vm4, %v4264_v13 }
 0x2d0   : > { %6287 = vmatprep.mubr.msk.f32.mxu1 %vm3390_vm4, %v4265_v26 }
 0x2d3   : > { %6288 = vmatmul.mubr.msk.f32.gmra.mrb[48].mxu1 %vm3390_vm4, %v4266_v28 }
 0x2d4   : > { %6290 = vmatprep.mubr.msk.f32.mxu1 %vm3390_vm4, %v4267_v40 }
 0x2d7   : > { %6291 = vmatmul.mubr.msk.f32.gmra.mrb[50].mxu1 %vm3390_vm4, %v4268_v42 }
 0x2d8   : > { %6293 = vmatprep.mubr.msk.f32.mxu1 %vm3390_vm4, %v4269_v41 }
 0x2db   : > { %6294 = vmatmul.mubr.msk.f32.gmra.mrb[52].mxu1 %vm3390_vm4, %v4270_v15 }
 0x2dc   : > { %6296 = vmatprep.mubr.msk.f32.mxu1 %vm3390_vm4, %v4271_v19 }
 0x2df   : > { %6297 = vmatmul.mubr.msk.f32.gmra.mrb[54].mxu1 %vm3390_vm4, %v4272_v60 }
 0x2e0   : > { %6299 = vmatprep.mubr.msk.f32.mxu1 %vm3390_vm4, %v4273_v17 }
 0x2e3   : > { %6300 = vmatmul.mubr.msk.f32.gmra.mrb[56].mxu1 %vm3390_vm4, %v4274_v45 }
 0x2e4   : > { %6302 = vmatprep.mubr.msk.f32.mxu1 %vm3390_vm4, %v4275_v29 }
 0x2e7   : > { %6303 = vmatmul.mubr.msk.f32.gmra.mrb[58].mxu1 %vm3390_vm4, %v4276_v43 }
 0x2e8   : > { %6305 = vmatprep.mubr.msk.f32.mxu1 %vm3390_vm4, %v4277_v62 }
 0x2eb   : > { %6306 = vmatmul.mubr.msk.f32.gmra.mrb[60].mxu1 %vm3390_vm4, %v4278_v47 }
 0x2ec   : > { %6308 = vmatprep.mubr.msk.f32.mxu1 %vm3390_vm4, %v4279_v49 }
 0x2ef   : > { %6309 = vmatmul.mubr.msk.f32.gmra.mrb[62].mxu1 %vm3390_vm4, %v4280_v51 }
 0x2f0   : > { %6311 = vmatprep.mubr.msk.f32.mxu1 %vm3390_vm4, %v4281_v16 }
 0x2f3   : > { %6312 = vmatmul.mubr.msk.f32.gmra.mrb[64].mxu1 %vm3390_vm4, %v4282_v30 }
 0x2f4   : > { %6314 = vmatprep.mubr.msk.f32.mxu1 %vm3390_vm4, %v4283_v53 }
 0x2f7   : > { %6315 = vmatmul.mubr.msk.f32.gmra.mrb[66].mxu1 %vm3390_vm4, %v4284_v0 }
 0x2f8   : > { %6317 = vmatprep.mubr.msk.f32.mxu1 %vm3390_vm4, %v4285_v44 }
 0x2fb   : > { %6318 = vmatmul.mubr.msk.f32.gmra.mrb[68].mxu1 %vm3390_vm4, %v4286_v55 }
 0x2fc   : > { %6320 = vmatprep.mubr.msk.f32.mxu1 %vm3390_vm4, %v4287_v3 }
 0x2ff   : > { %6321 = vmatmul.mubr.msk.f32.gmra.mrb[70].mxu1 %vm3390_vm4, %v4288_v31 }
 0x300   : > { %6323 = vmatprep.mubr.msk.f32.mxu1 %vm3390_vm4, %v4289_v14 }
 0x303   : > { %6324 = vmatmul.mubr.msk.f32.gmra.mrb[72].mxu1 %vm3390_vm4, %v4290_v46 }
 0x304   : > { %6326 = vmatprep.mubr.msk.f32.mxu1 %vm3390_vm4, %v4291_v25 }
 0x307   : > { %6327 = vmatmul.mubr.msk.f32.gmra.mrb[74].mxu1 %vm3390_vm4, %v4292_v57 }
 0x392   : > { %v6274_v18 = vpop.f32.mrb[38].mxu1 }
 0x393   : > { %v4713_v5 = vadd.f32 %v6274_v18, %v7739_v59  ;;  %v4478_v21 = vpop.f32.mrb[39].mxu1 }
 0x394   : > { %v4712_v61 = vadd.f32 %v7739_v59, %v4478_v21 }
 0x395   : > { %v4751_v6 = vmax.f32 %v4713_v5, 0.0 }
 0x396   : > { %v4750_v48 = vmax.f32 %v4712_v61, 0.0  ;;  %v6277_v63 = vpop.f32.mrb[40].mxu1 }
 0x397   : > { %4790 = vst.msk [vmem:[%s7745_s10 + $0x8] sm:$0xff] %vm4788_vm6, %v4751_v6  ;;  %v4715_v33 = vadd.f32 %v6277_v63, %v7739_v59  ;;  %v4488_v50 = vpop.f32.mrb[41].mxu1 }
 0x398   : > { %4789 = vst.msk [vmem:[%s7745_s10] sm:$0xff] %vm4788_vm6, %v4750_v48  ;;  %v4714_v1 = vadd.f32 %v7739_v59, %v4488_v50 }
 0x399   : > { %v4753_v23 = vmax.f32 %v4715_v33, 0.0 }
 0x39a   : > { %v4752_v7 = vmax.f32 %v4714_v1, 0.0  ;;  %v6280_v35 = vpop.f32.mrb[42].mxu1 }
 0x39b   : > { %4792 = vst.msk [vmem:[%s7745_s10 + $0x18] sm:$0xff] %vm4788_vm6, %v4753_v23  ;;  %v4717_v4 = vadd.f32 %v6280_v35, %v7739_v59  ;;  %v4498_v8 = vpop.f32.mrb[43].mxu1 }
 0x39c   : > { %4791 = vst.msk [vmem:[%s7745_s10 + $0x10] sm:$0xff] %vm4788_vm6, %v4752_v7  ;;  %v4716_v12 = vadd.f32 %v7739_v59, %v4498_v8 }
 0x39d   : > { %v4755_v20 = vmax.f32 %v4717_v4, 0.0 }
 0x39e   : > { %v4754_v52 = vmax.f32 %v4716_v12, 0.0  ;;  %v6283_v22 = vpop.f32.mrb[44].mxu1 }
 0x39f   : > { %4794 = vst.msk [vmem:[%s7745_s10 + $0x28] sm:$0xff] %vm4788_vm6, %v4755_v20  ;;  %v4719_v24 = vadd.f32 %v6283_v22, %v7739_v59  ;;  %v4508_v54 = vpop.f32.mrb[45].mxu1 }
 0x3a0   : > { %4793 = vst.msk [vmem:[%s7745_s10 + $0x20] sm:$0xff] %vm4788_vm6, %v4754_v52  ;;  %v4718_v9 = vadd.f32 %v7739_v59, %v4508_v54 }
 0x3a1   : > { %v4757_v27 = vmax.f32 %v4719_v24, 0.0 }
 0x3a2   : > { %v4756_v2 = vmax.f32 %v4718_v9, 0.0  ;;  %v6286_v10 = vpop.f32.mrb[46].mxu1 }
 0x3a3   : > { %4796 = vst.msk [vmem:[%s7745_s10 + $0x38] sm:$0xff] %vm4788_vm6, %v4757_v27  ;;  %v4721_v37 = vadd.f32 %v6286_v10, %v7739_v59  ;;  %v4518_v32 = vpop.f32.mrb[47].mxu1 }
 0x3a4   : > { %4795 = vst.msk [vmem:[%s7745_s10 + $0x30] sm:$0xff] %vm4788_vm6, %v4756_v2  ;;  %v4720_v34 = vadd.f32 %v7739_v59, %v4518_v32 }
 0x3a5   : > { %v4759_v39 = vmax.f32 %v4721_v37, 0.0 }
 0x3a6   : > { %v4758_v56 = vmax.f32 %v4720_v34, 0.0  ;;  %v6289_v36 = vpop.f32.mrb[48].mxu1 }
 0x3a7   : > { %4798 = vst.msk [vmem:[%s7745_s10 + $0x48] sm:$0xff] %vm4788_vm6, %v4759_v39  ;;  %v4723_v11 = vadd.f32 %v6289_v36, %v7739_v59  ;;  %v4528_v38 = vpop.f32.mrb[49].mxu1 }
 0x3a8   : > { %4797 = vst.msk [vmem:[%s7745_s10 + $0x40] sm:$0xff] %vm4788_vm6, %v4758_v56  ;;  %v4722_v58 = vadd.f32 %v7739_v59, %v4528_v38 }
 0x3a9   : > { %v4761_v13 = vmax.f32 %v4723_v11, 0.0 }
 0x3aa   : > { %v4760_v26 = vmax.f32 %v4722_v58, 0.0  ;;  %v6292_v28 = vpop.f32.mrb[50].mxu1 }
 0x3ab   : > { %4800 = vst.msk [vmem:[%s7745_s10 + $0x58] sm:$0xff] %vm4788_vm6, %v4761_v13  ;;  %v4725_v40 = vadd.f32 %v6292_v28, %v7739_v59  ;;  %v4538_v42 = vpop.f32.mrb[51].mxu1 }
 0x3ac   : > { %4799 = vst.msk [vmem:[%s7745_s10 + $0x50] sm:$0xff] %vm4788_vm6, %v4760_v26  ;;  %v4724_v41 = vadd.f32 %v7739_v59, %v4538_v42 }
 0x3ad   : > { %v4763_v15 = vmax.f32 %v4725_v40, 0.0 }
 0x3ae   : > { %v4762_v19 = vmax.f32 %v4724_v41, 0.0  ;;  %v6295_v60 = vpop.f32.mrb[52].mxu1 }
 0x3af   : > { %4802 = vst.msk [vmem:[%s7745_s10 + $0x68] sm:$0xff] %vm4788_vm6, %v4763_v15  ;;  %v4727_v17 = vadd.f32 %v6295_v60, %v7739_v59  ;;  %v4548_v45 = vpop.f32.mrb[53].mxu1 }
 0x3b0   : > { %4801 = vst.msk [vmem:[%s7745_s10 + $0x60] sm:$0xff] %vm4788_vm6, %v4762_v19  ;;  %v4726_v29 = vadd.f32 %v7739_v59, %v4548_v45 }
 0x3b1   : > { %v4765_v43 = vmax.f32 %v4727_v17, 0.0 }
 0x3b2   : > { %v4764_v62 = vmax.f32 %v4726_v29, 0.0  ;;  %v6298_v47 = vpop.f32.mrb[54].mxu1 }
 0x3b3   : > { %4804 = vst.msk [vmem:[%s7745_s10 + $0x78] sm:$0xff] %vm4788_vm6, %v4765_v43  ;;  %v4729_v49 = vadd.f32 %v6298_v47, %v7739_v59  ;;  %v4558_v51 = vpop.f32.mrb[55].mxu1 }
 0x3b4   : > { %4803 = vst.msk [vmem:[%s7745_s10 + $0x70] sm:$0xff] %vm4788_vm6, %v4764_v62  ;;  %v4728_v16 = vadd.f32 %v7739_v59, %v4558_v51 }
 0x3b5   : > { %v4767_v30 = vmax.f32 %v4729_v49, 0.0 }
 0x3b6   : > { %v4766_v53 = vmax.f32 %v4728_v16, 0.0  ;;  %v6301_v0 = vpop.f32.mrb[56].mxu1 }
 0x3b7   : > { %4806 = vst.msk [vmem:[%s7745_s10 + $0x88] sm:$0xff] %vm4788_vm6, %v4767_v30  ;;  %v4731_v44 = vadd.f32 %v6301_v0, %v7739_v59  ;;  %v4568_v55 = vpop.f32.mrb[57].mxu1 }
 0x3b8   : > { %4805 = vst.msk [vmem:[%s7745_s10 + $0x80] sm:$0xff] %vm4788_vm6, %v4766_v53  ;;  %v4730_v3 = vadd.f32 %v7739_v59, %v4568_v55 }
 0x3b9   : > { %v4769_v31 = vmax.f32 %v4731_v44, 0.0 }
 0x3ba   : > { %v4768_v14 = vmax.f32 %v4730_v3, 0.0  ;;  %v6304_v46 = vpop.f32.mrb[58].mxu1 }
 0x3bb   : > { %4808 = vst.msk [vmem:[%s7745_s10 + $0x98] sm:$0xff] %vm4788_vm6, %v4769_v31  ;;  %v4733_v25 = vadd.f32 %v6304_v46, %v7739_v59  ;;  %v4578_v57 = vpop.f32.mrb[59].mxu1 }
 0x3bc   : > { %4807 = vst.msk [vmem:[%s7745_s10 + $0x90] sm:$0xff] %vm4788_vm6, %v4768_v14  ;;  %v4732_v18 = vadd.f32 %v7739_v59, %v4578_v57 }
 0x3bd   : > { %v4771_v5 = vmax.f32 %v4733_v25, 0.0 }
 0x3be   : > { %v4770_v21 = vmax.f32 %v4732_v18, 0.0  ;;  %v6307_v61 = vpop.f32.mrb[60].mxu1 }
 0x3bf   : > { %4810 = vst.msk [vmem:[%s7745_s10 + $0xa8] sm:$0xff] %vm4788_vm6, %v4771_v5  ;;  %v4735_v6 = vadd.f32 %v6307_v61, %v7739_v59  ;;  %v4588_v48 = vpop.f32.mrb[61].mxu1 }
 0x3c0   : > { %4809 = vst.msk [vmem:[%s7745_s10 + $0xa0] sm:$0xff] %vm4788_vm6, %v4770_v21  ;;  %v4734_v63 = vadd.f32 %v7739_v59, %v4588_v48 }
 0x3c1   : > { %v4773_v33 = vmax.f32 %v4735_v6, 0.0 }
 0x3c2   : > { %v4772_v50 = vmax.f32 %v4734_v63, 0.0  ;;  %v6310_v1 = vpop.f32.mrb[62].mxu1 }
 0x3c3   : > { %4812 = vst.msk [vmem:[%s7745_s10 + $0xb8] sm:$0xff] %vm4788_vm6, %v4773_v33  ;;  %v4737_v23 = vadd.f32 %v6310_v1, %v7739_v59  ;;  %v4598_v7 = vpop.f32.mrb[63].mxu1 }
 0x3c4   : > { %4811 = vst.msk [vmem:[%s7745_s10 + $0xb0] sm:$0xff] %vm4788_vm6, %v4772_v50  ;;  %v4736_v35 = vadd.f32 %v7739_v59, %v4598_v7 }
 0x3c5   : > { %v4775_v4 = vmax.f32 %v4737_v23, 0.0 }
 0x3c6   : > { %v4774_v8 = vmax.f32 %v4736_v35, 0.0  ;;  %v6313_v12 = vpop.f32.mrb[64].mxu1 }
 0x3c7   : > { %4814 = vst.msk [vmem:[%s7745_s10 + $0xc8] sm:$0xff] %vm4788_vm6, %v4775_v4  ;;  %v4739_v20 = vadd.f32 %v6313_v12, %v7739_v59  ;;  %v4608_v52 = vpop.f32.mrb[65].mxu1 }
 0x3c8   : > { %4813 = vst.msk [vmem:[%s7745_s10 + $0xc0] sm:$0xff] %vm4788_vm6, %v4774_v8  ;;  %v4738_v22 = vadd.f32 %v7739_v59, %v4608_v52 }
 0x3c9   : > { %v4777_v24 = vmax.f32 %v4739_v20, 0.0 }
 0x3ca   : > { %v4776_v54 = vmax.f32 %v4738_v22, 0.0  ;;  %v6316_v9 = vpop.f32.mrb[66].mxu1 }
 0x3cb   : > { %4816 = vst.msk [vmem:[%s7745_s10 + $0xd8] sm:$0xff] %vm4788_vm6, %v4777_v24  ;;  %v4741_v27 = vadd.f32 %v6316_v9, %v7739_v59  ;;  %v4618_v2 = vpop.f32.mrb[67].mxu1 }
 0x3cc   : > { %4815 = vst.msk [vmem:[%s7745_s10 + $0xd0] sm:$0xff] %vm4788_vm6, %v4776_v54  ;;  %v4740_v10 = vadd.f32 %v7739_v59, %v4618_v2 }
 0x3cd   : > { %v4779_v37 = vmax.f32 %v4741_v27, 0.0 }
 0x3ce   : > { %v4778_v32 = vmax.f32 %v4740_v10, 0.0  ;;  %v6319_v34 = vpop.f32.mrb[68].mxu1 }
 0x3cf   : > { %4818 = vst.msk [vmem:[%s7745_s10 + $0xe8] sm:$0xff] %vm4788_vm6, %v4779_v37  ;;  %v4743_v39 = vadd.f32 %v6319_v34, %v7739_v59  ;;  %v4628_v56 = vpop.f32.mrb[69].mxu1 }
 0x3d0   : > { %4817 = vst.msk [vmem:[%s7745_s10 + $0xe0] sm:$0xff] %vm4788_vm6, %v4778_v32  ;;  %v4742_v36 = vadd.f32 %v7739_v59, %v4628_v56 }
 0x3d1   : > { %v4781_v11 = vmax.f32 %v4743_v39, 0.0 }
 0x3d2   : > { %v4780_v38 = vmax.f32 %v4742_v36, 0.0  ;;  %v6322_v58 = vpop.f32.mrb[70].mxu1 }
 0x3d3   : > { %4820 = vst.msk [vmem:[%s7745_s10 + $0xf8] sm:$0xff] %vm4788_vm6, %v4781_v11  ;;  %v4745_v13 = vadd.f32 %v6322_v58, %v7739_v59  ;;  %v4638_v26 = vpop.f32.mrb[71].mxu1 }
 0x3d4   : > { %4819 = vst.msk [vmem:[%s7745_s10 + $0xf0] sm:$0xff] %vm4788_vm6, %v4780_v38  ;;  %v4744_v28 = vadd.f32 %v7739_v59, %v4638_v26 }
 0x3d5   : > { %v4783_v40 = vmax.f32 %v4745_v13, 0.0 }
 0x3d6   : > { %v4782_v42 = vmax.f32 %v4744_v28, 0.0  ;;  %v6325_v41 = vpop.f32.mrb[72].mxu1 }
 0x3d7   : > { %4822 = vst.msk [vmem:[%s7745_s10 + $0x108] sm:$0xff] %vm4788_vm6, %v4783_v40  ;;  %v4747_v15 = vadd.f32 %v6325_v41, %v7739_v59  ;;  %v4648_v19 = vpop.f32.mrb[73].mxu1 }
 0x3d8   : > { %4821 = vst.msk [vmem:[%s7745_s10 + $0x100] sm:$0xff] %vm4788_vm6, %v4782_v42  ;;  %v4746_v60 = vadd.f32 %v7739_v59, %v4648_v19 }
 0x3d9   : > { %v4785_v17 = vmax.f32 %v4747_v15, 0.0 }
 0x3da   : > { %v4784_v45 = vmax.f32 %v4746_v60, 0.0  ;;  %v6328_v29 = vpop.f32.mrb[74].mxu1 }
 0x3db   : > { %4824 = vst.msk [vmem:[%s7745_s10 + $0x118] sm:$0xff] %vm4788_vm6, %v4785_v17  ;;  %v4749_v43 = vadd.f32 %v6328_v29, %v7739_v59  ;;  %v4658_v62 = vpop.f32.mrb[75].mxu1 }
 0x3dc   : > { %4823 = vst.msk [vmem:[%s7745_s10 + $0x110] sm:$0xff] %vm4788_vm6, %v4784_v45  ;;  %v4748_v47 = vadd.f32 %v7739_v59, %v4658_v62 }
 0x3dd   : > { %v4787_v49 = vmax.f32 %v4749_v43, 0.0 }
 0x3de   : > { %v4786_v51 = vmax.f32 %v4748_v47, 0.0 }
 0x3df   : > { %4827 = vst.msk [vmem:[%s7745_s10 + $0x128] sm:$0xf] %vm4826_vm7, %v4787_v49 }
 0x3e0   : > { %4825 = vst.msk [vmem:[%s7745_s10 + $0x120] sm:$0xff] %vm4788_vm6, %v4786_v51 }
 0x3e1 PF: > { %s15_s18 = sadd.s32 1, %s6717_s18  }
 0x3e2   : > { %p12_p4 = scmp.ge.s32.totalorder %s15_s18, 4  }
 0x3e4   :  { %14 = sbr.rel (!%p12_p4) target bundleno = 1 (0x1), region = 78 }

</bundles_post_ra>
